<compile_context>
chip_gen: v7x
topology: tpu7x:2x2x1
jax: 0.10.0
libtpu: 0.0.40
codegen_flags: <defaults>
</compile_context>

<pallas_src>
import math
import jax
import jax.numpy as jnp
from jax import lax
from jax.experimental import pallas as pl
from jax.experimental.pallas import tpu as pltpu

# --- small, module-consistent shapes -----------------------------------------
B, S, E = 2, 8, 32          # batch, seq_len, embed_dim
KD, VD, H = 32, 32, 4       # key_dim, value_dim, n_heads
CUTOFF = 16                 # relative_cutoff
NREL = 2 * S - 1            # rows of the per-call relative table
PROJ = 4 * KD               # per-head projection width in the fused slab


# --- Pallas kernel -------------------------------------------------------------
def mdip_kernel(xs_ref, w_ref, rel_ref, wvec_ref, out_ref):
    x = xs_ref[0]                                                      # (S, E)

    # One lane-dense projection matmul for all heads and all four projections.
    # Per head h, columns [h*128, (h+1)*128) are [q | k | v*w_o | pq], with the
    # 1/sqrt(VD) attention scale pre-folded into the q / pq weights.
    proj = jnp.dot(x, w_ref[...], preferred_element_type=jnp.float32)  # (S, 512)

    rel_emb = rel_ref[...]                                             # (2S-1, KD)
    wvec = wvec_ref[...]                                               # (1, S)

    # Skew pattern: rel[i, j] = rel_scores[i, j - i + (S - 1)].
    ii = lax.broadcasted_iota(jnp.int32, (S, S), 0)
    jj = lax.broadcasted_iota(jnp.int32, (S, S), 1)
    d = jj - ii + (S - 1)                                              # in [0, 2S-2]
    band = [d == r for r in range(NREL)]                               # hoisted masks

    z_list = []
    for h in range(H):                                                 # unrolled, H=4
        base = h * PROJ
        q = proj[:, base + 0 * KD: base + 1 * KD]                      # (S, KD)
        k = proj[:, base + 1 * KD: base + 2 * KD]                      # (S, KD)
        v = proj[:, base + 2 * KD: base + 3 * KD]                      # (S, VD)
        pq = proj[:, base + 3 * KD: base + 4 * KD]                     # (S, KD)

        # content term (MXU)
        qk = jnp.einsum('iq,jq->ij', q, k,
                        preferred_element_type=jnp.float32)            # (S, S)
        # relative term against the compact table (MXU), then skew in-register
        rs = jnp.einsum('iq,rq->ir', pq, rel_emb,
                        preferred_element_type=jnp.float32)            # (S, 2S-1)
        rel = jnp.zeros((S, S), jnp.float32)
        for r in range(NREL):
            rel = rel + jnp.where(band[r], rs[:, r:r + 1], 0.0)

        e = qk + rel                                                   # scale pre-folded
        e = e - jnp.max(e, axis=-1, keepdims=True)
        p = jnp.exp(e)
        alphas = p * pl.reciprocal(jnp.sum(p, axis=-1, keepdims=True), approx=True)
        z_list.append(jnp.dot(alphas, v, preferred_element_type=jnp.float32))  # (S, VD)

    # Heads concatenated -> lane-dense (S, 128); single pooling matmul; one
    # unmasked 128-wide store.
    z_all = jnp.concatenate(z_list, axis=1)                            # (S, H*VD)
    out_ref[...] = jnp.dot(wvec, z_all,
                           preferred_element_type=jnp.float32)[None]   # (1, 1, H*VD)


# --- wrapper ------------------------------------------------------------------
def multi_directional_informed_prediction(xs, params):
    w_q, w_k, w_v = params['w_q'], params['w_k'], params['w_v']
    w_o, a_q, a_k = params['w_o'], params['a_q'], params['a_k']
    a_wf, a_wb = params['a_wf'], params['a_wb']

    inv_scale = 1.0 / math.sqrt(VD)
    # fold 1/sqrt(VD) into the query-side projections and w_o into the values
    w_q_s = w_q * inv_scale                                            # (H, E, KD)
    a_q_s = a_q * inv_scale                                            # (H, E, KD)
    w_v_s = w_v * w_o[:, None, None]                                   # (H, E, VD)

    # fused lane-dense weight slab: (E, H*4*KD); per head: [q | k | v | pq]
    w_all = jnp.concatenate([w_q_s, w_k, w_v_s, a_q_s], axis=2)        # (H, E, 4*KD)
    w_all = jnp.transpose(w_all, (1, 0, 2)).reshape(E, H * PROJ)       # (E, 512)

    # compact relative table: rel_emb[r] = a_k[clip(r-(S-1), -C, C) + C]
    pos = jnp.clip(jnp.arange(-S + 1, S), -CUTOFF, CUTOFF) + CUTOFF
    rel_emb = a_k[pos]                                                 # (2S-1, KD)

    # directional sequence weights (softmax over seq axis)
    s_idx = jnp.arange(S)
    fwd = a_wf[jnp.clip(s_idx, 0, CUTOFF)]
    bwd = a_wb[jnp.clip(S - 1 - s_idx, 0, CUTOFF)]
    w_vec = jax.nn.softmax(fwd + bwd).reshape(1, S)

    grid_spec = pltpu.PrefetchScalarGridSpec(
        num_scalar_prefetch=0,
        grid=(B,),
        in_specs=[
            pl.BlockSpec((1, S, E), lambda b: (b, 0, 0)),              # xs
            pl.BlockSpec((E, H * PROJ), lambda b: (0, 0)),             # fused weights
            pl.BlockSpec((NREL, KD), lambda b: (0, 0)),                # rel_emb
            pl.BlockSpec((1, S), lambda b: (0, 0)),                    # pooling weights
        ],
        out_specs=pl.BlockSpec((1, 1, H * VD), lambda b: (b, 0, 0)),
    )

    out = pl.pallas_call(
        mdip_kernel,
        out_shape=jax.ShapeDtypeStruct((B, 1, H * VD), jnp.float32),
        grid_spec=grid_spec,
        compiler_params=pltpu.CompilerParams(
            dimension_semantics=("parallel",)),
    )(xs, w_all, rel_emb, w_vec)

    # sum head contributions (w_o already folded into the value projection)
    return out[:, 0, :].reshape(B, H, VD).sum(axis=1)                  # (B, VD)


# --- pure-JAX reference (mirrors the PyTorch code, incl. the skew trick) ------
def _skew(m):  # m: (B, H, S, 2S-1)
    s = m.shape[2]
    m = jnp.pad(m, ((0, 0), (0, 0), (0, 0), (0, 1)))
    m = m.reshape(m.shape[0], m.shape[1], -1)
    m = jnp.pad(m, ((0, 0), (0, 0), (0, s - 1)))
    m = m.reshape(m.shape[0], m.shape[1], s + 1, 2 * s - 1)
    return m[:, :, :s, m.shape[3] - s:]


def reference(xs, p):
    q = jnp.einsum('bse,heq->bhsq', xs, p['w_q'])
    k = jnp.einsum('bse,hek->bhsk', xs, p['w_k'])
    v = jnp.einsum('bse,hev->bhsv', xs, p['w_v'])
    qk = jnp.einsum('bhiq,bhjq->bhij', q, k)
    pq = jnp.einsum('bse,heq->bhsq', xs, p['a_q'])
    pos_vec = jnp.clip(jnp.arange(-S + 1, S), -CUTOFF, CUTOFF) + CUTOFF
    rel_emb = p['a_k'][pos_vec]                       # (2S-1, KD)
    q_rel = _skew(jnp.einsum('bhiq,rq->bhir', pq, rel_emb))
    e = (qk + q_rel) / math.sqrt(VD)
    alphas = jax.nn.softmax(e, axis=3)
    z = jnp.einsum('bhij,bhjv->bhiv', alphas, v)
    attn_out = jnp.einsum('bhsv,h->bsv', z, p['w_o'])
    s_idx = jnp.arange(S)
    w = jax.nn.softmax(p['a_wf'][jnp.clip(s_idx, 0, CUTOFF)] +
                       p['a_wb'][jnp.clip(S - 1 - s_idx, 0, CUTOFF)])
    return jnp.einsum('bsv,s->bv', attn_out, w)


# --- deterministic parameter init ---------------------------------------------
def init_params(key):
    ks = jax.random.split(key, 6)

    def u(k, shape, fan_in):
        b = 1.0 / math.sqrt(fan_in)
        return jax.random.uniform(k, shape, jnp.float32, -b, b)

    return dict(
        w_q=u(ks[0], (H, E, KD), E),
        w_k=u(ks[1], (H, E, KD), E),
        w_v=u(ks[2], (H, E, VD), E),
        w_o=jnp.ones((H,), jnp.float32),                      # init.ones_
        a_q=u(ks[3], (H, E, KD), E),
        a_k=u(ks[4], (2 * CUTOFF + 1, KD), KD),
        a_v=u(ks[5], (2 * CUTOFF + 1, VD), VD),               # defined but unused in forward
        a_wf=jnp.ones((CUTOFF + 1,), jnp.float32),            # init.ones_
        a_wb=jnp.ones((CUTOFF + 1,), jnp.float32),            # init.ones_
    )


if __name__ == "__main__":
    key = jax.random.PRNGKey(0)
    k_x, k_p = jax.random.split(key)
    xs = jax.random.normal(k_x, (B, S, E), dtype=jnp.float32)
    params = init_params(k_p)

    out = jax.block_until_ready(multi_directional_informed_prediction(xs, params))
    ref = jax.block_until_ready(reference(xs, params))

    assert out.shape == (B, VD), out.shape
    # tolerance accounts for the approximate EUP reciprocal in the softmax
    assert jnp.allclose(out, ref, rtol=2e-3, atol=2e-3), \
        f"max abs diff = {jnp.max(jnp.abs(out - ref))}"
    print("KERNEL_OK")
</pallas_src>

<mosaic_0001>
module attributes {stable_mosaic.version = 11 : i64} {
  func.func @mdip_kernel(%arg0: i32, %arg1: memref<1x8x32xf32, #tpu.memory_space<vmem>>, %arg2: memref<32x512xf32, #tpu.memory_space<vmem>>, %arg3: memref<15x32xf32, #tpu.memory_space<vmem>>, %arg4: memref<1x8xf32, #tpu.memory_space<vmem>>, %arg5: memref<1x1x128xf32, #tpu.memory_space<vmem>>) attributes {dimension_semantics = [#tpu.dimension_semantics<parallel>], iteration_bounds = array<i64: 2>, scalar_prefetch = 0 : i64, scratch_operands = 0 : i64, tpu.core_type = #tpu.core_type<tc>, window_params = [{transform_indices = @transform_0, window_bounds = array<i64: 1, 8, 32>}, {pipeline_mode = #tpu.pipeline_mode<synchronous>, transform_indices = @transform_1, window_bounds = array<i64: 32, 512>}, {pipeline_mode = #tpu.pipeline_mode<synchronous>, transform_indices = @transform_2, window_bounds = array<i64: 15, 32>}, {pipeline_mode = #tpu.pipeline_mode<synchronous>, transform_indices = @transform_3, window_bounds = array<i64: 1, 8>}, {transform_indices = @transform_4, window_bounds = array<i64: 1, 1, 128>}]} {
    %c0 = arith.constant 0 : index
    %c0_0 = arith.constant 0 : index
    %c0_1 = arith.constant 0 : index
    %0 = vector.load %arg1[%c0, %c0_0, %c0_1] : memref<1x8x32xf32, #tpu.memory_space<vmem>>, vector<1x8x32xf32>
    %1 = vector.shape_cast %0 : vector<1x8x32xf32> to vector<8x32xf32>
    %c0_2 = arith.constant 0 : index
    %c0_3 = arith.constant 0 : index
    %2 = vector.load %arg2[%c0_2, %c0_3] : memref<32x512xf32, #tpu.memory_space<vmem>>, vector<32x512xf32>
    %cst = arith.constant dense<0.000000e+00> : vector<8x512xf32>
    %3 = tpu.matmul %1, %2, %cst {dimension_numbers = #tpu.dot_dimension_numbers<[1], [0], [0], [1], [0, 0, 1, 1], [], []>} : vector<8x32xf32>, vector<32x512xf32>, vector<8x512xf32> -> vector<8x512xf32>
    %c0_4 = arith.constant 0 : index
    %c0_5 = arith.constant 0 : index
    %4 = vector.load %arg3[%c0_4, %c0_5] : memref<15x32xf32, #tpu.memory_space<vmem>>, vector<15x32xf32>
    %c0_6 = arith.constant 0 : index
    %c0_7 = arith.constant 0 : index
    %5 = vector.load %arg4[%c0_6, %c0_7] : memref<1x8xf32, #tpu.memory_space<vmem>>, vector<1x8xf32>
    %6 = tpu.iota {dimensions = array<i32: 0>} : vector<8x8xi32>
    %7 = tpu.iota {dimensions = array<i32: 1>} : vector<8x8xi32>
    %8 = arith.subi %7, %6 : vector<8x8xi32>
    %c7_i32 = arith.constant 7 : i32
    %9 = vector.broadcast %c7_i32 : i32 to vector<8x8xi32>
    %10 = arith.addi %8, %9 : vector<8x8xi32>
    %c0_i32 = arith.constant 0 : i32
    %11 = vector.broadcast %c0_i32 : i32 to vector<8x8xi32>
    %12 = arith.cmpi eq, %10, %11 : vector<8x8xi32>
    %c1_i32 = arith.constant 1 : i32
    %13 = vector.broadcast %c1_i32 : i32 to vector<8x8xi32>
    %14 = arith.cmpi eq, %10, %13 : vector<8x8xi32>
    %c2_i32 = arith.constant 2 : i32
    %15 = vector.broadcast %c2_i32 : i32 to vector<8x8xi32>
    %16 = arith.cmpi eq, %10, %15 : vector<8x8xi32>
    %c3_i32 = arith.constant 3 : i32
    %17 = vector.broadcast %c3_i32 : i32 to vector<8x8xi32>
    %18 = arith.cmpi eq, %10, %17 : vector<8x8xi32>
    %c4_i32 = arith.constant 4 : i32
    %19 = vector.broadcast %c4_i32 : i32 to vector<8x8xi32>
    %20 = arith.cmpi eq, %10, %19 : vector<8x8xi32>
    %c5_i32 = arith.constant 5 : i32
    %21 = vector.broadcast %c5_i32 : i32 to vector<8x8xi32>
    %22 = arith.cmpi eq, %10, %21 : vector<8x8xi32>
    %c6_i32 = arith.constant 6 : i32
    %23 = vector.broadcast %c6_i32 : i32 to vector<8x8xi32>
    %24 = arith.cmpi eq, %10, %23 : vector<8x8xi32>
    %c7_i32_8 = arith.constant 7 : i32
    %25 = vector.broadcast %c7_i32_8 : i32 to vector<8x8xi32>
    %26 = arith.cmpi eq, %10, %25 : vector<8x8xi32>
    %c8_i32 = arith.constant 8 : i32
    %27 = vector.broadcast %c8_i32 : i32 to vector<8x8xi32>
    %28 = arith.cmpi eq, %10, %27 : vector<8x8xi32>
    %c9_i32 = arith.constant 9 : i32
    %29 = vector.broadcast %c9_i32 : i32 to vector<8x8xi32>
    %30 = arith.cmpi eq, %10, %29 : vector<8x8xi32>
    %c10_i32 = arith.constant 10 : i32
    %31 = vector.broadcast %c10_i32 : i32 to vector<8x8xi32>
    %32 = arith.cmpi eq, %10, %31 : vector<8x8xi32>
    %c11_i32 = arith.constant 11 : i32
    %33 = vector.broadcast %c11_i32 : i32 to vector<8x8xi32>
    %34 = arith.cmpi eq, %10, %33 : vector<8x8xi32>
    %c12_i32 = arith.constant 12 : i32
    %35 = vector.broadcast %c12_i32 : i32 to vector<8x8xi32>
    %36 = arith.cmpi eq, %10, %35 : vector<8x8xi32>
    %c13_i32 = arith.constant 13 : i32
    %37 = vector.broadcast %c13_i32 : i32 to vector<8x8xi32>
    %38 = arith.cmpi eq, %10, %37 : vector<8x8xi32>
    %c14_i32 = arith.constant 14 : i32
    %39 = vector.broadcast %c14_i32 : i32 to vector<8x8xi32>
    %40 = arith.cmpi eq, %10, %39 : vector<8x8xi32>
    %41 = vector.extract_strided_slice %3 {offsets = [0, 0], sizes = [8, 32], strides = [1, 1]} : vector<8x512xf32> to vector<8x32xf32>
    %42 = vector.extract_strided_slice %3 {offsets = [0, 32], sizes = [8, 32], strides = [1, 1]} : vector<8x512xf32> to vector<8x32xf32>
    %43 = vector.extract_strided_slice %3 {offsets = [0, 64], sizes = [8, 32], strides = [1, 1]} : vector<8x512xf32> to vector<8x32xf32>
    %44 = vector.extract_strided_slice %3 {offsets = [0, 96], sizes = [8, 32], strides = [1, 1]} : vector<8x512xf32> to vector<8x32xf32>
    "tpu.trace_start"() <{level = 10 : i32, message = "iq,jq->ij"}> : () -> ()
    %cst_9 = arith.constant dense<0.000000e+00> : vector<8x8xf32>
    %45 = tpu.matmul %41, %42, %cst_9 {dimension_numbers = #tpu.dot_dimension_numbers<[1], [1], [0], [0], [0, 0, 1, 0], [], []>} : vector<8x32xf32>, vector<8x32xf32>, vector<8x8xf32> -> vector<8x8xf32>
    "tpu.trace_stop"() : () -> ()
    "tpu.trace_start"() <{level = 10 : i32, message = "iq,rq->ir"}> : () -> ()
    %cst_10 = arith.constant dense<0.000000e+00> : vector<8x15xf32>
    %46 = tpu.matmul %44, %4, %cst_10 {dimension_numbers = #tpu.dot_dimension_numbers<[1], [1], [0], [0], [0, 0, 1, 0], [], []>} : vector<8x32xf32>, vector<15x32xf32>, vector<8x15xf32> -> vector<8x15xf32>
    %cst_11 = arith.constant 0.000000e+00 : f32
    "tpu.trace_stop"() : () -> ()
    %47 = vector.broadcast %cst_11 : f32 to vector<8x8xf32>
    %48 = vector.extract_strided_slice %46 {offsets = [0, 0], sizes = [8, 1], strides = [1, 1]} : vector<8x15xf32> to vector<8x1xf32>
    %cst_12 = arith.constant 0.000000e+00 : f32
    %49 = vector.shape_cast %48 : vector<8x1xf32> to vector<8x1xf32>
    %50 = vector.broadcast %49 : vector<8x1xf32> to vector<8x8xf32>
    %51 = vector.broadcast %cst_12 : f32 to vector<8x8xf32>
    %52 = arith.select %12, %50, %51 : vector<8x8xi1>, vector<8x8xf32>
    %53 = arith.addf %47, %52 : vector<8x8xf32>
    %54 = vector.extract_strided_slice %46 {offsets = [0, 1], sizes = [8, 1], strides = [1, 1]} : vector<8x15xf32> to vector<8x1xf32>
    %cst_13 = arith.constant 0.000000e+00 : f32
    %55 = vector.shape_cast %54 : vector<8x1xf32> to vector<8x1xf32>
    %56 = vector.broadcast %55 : vector<8x1xf32> to vector<8x8xf32>
    %57 = vector.broadcast %cst_13 : f32 to vector<8x8xf32>
    %58 = arith.select %14, %56, %57 : vector<8x8xi1>, vector<8x8xf32>
    %59 = arith.addf %53, %58 : vector<8x8xf32>
    %60 = vector.extract_strided_slice %46 {offsets = [0, 2], sizes = [8, 1], strides = [1, 1]} : vector<8x15xf32> to vector<8x1xf32>
    %cst_14 = arith.constant 0.000000e+00 : f32
    %61 = vector.shape_cast %60 : vector<8x1xf32> to vector<8x1xf32>
    %62 = vector.broadcast %61 : vector<8x1xf32> to vector<8x8xf32>
    %63 = vector.broadcast %cst_14 : f32 to vector<8x8xf32>
    %64 = arith.select %16, %62, %63 : vector<8x8xi1>, vector<8x8xf32>
    %65 = arith.addf %59, %64 : vector<8x8xf32>
    %66 = vector.extract_strided_slice %46 {offsets = [0, 3], sizes = [8, 1], strides = [1, 1]} : vector<8x15xf32> to vector<8x1xf32>
    %cst_15 = arith.constant 0.000000e+00 : f32
    %67 = vector.shape_cast %66 : vector<8x1xf32> to vector<8x1xf32>
    %68 = vector.broadcast %67 : vector<8x1xf32> to vector<8x8xf32>
    %69 = vector.broadcast %cst_15 : f32 to vector<8x8xf32>
    %70 = arith.select %18, %68, %69 : vector<8x8xi1>, vector<8x8xf32>
    %71 = arith.addf %65, %70 : vector<8x8xf32>
    %72 = vector.extract_strided_slice %46 {offsets = [0, 4], sizes = [8, 1], strides = [1, 1]} : vector<8x15xf32> to vector<8x1xf32>
    %cst_16 = arith.constant 0.000000e+00 : f32
    %73 = vector.shape_cast %72 : vector<8x1xf32> to vector<8x1xf32>
    %74 = vector.broadcast %73 : vector<8x1xf32> to vector<8x8xf32>
    %75 = vector.broadcast %cst_16 : f32 to vector<8x8xf32>
    %76 = arith.select %20, %74, %75 : vector<8x8xi1>, vector<8x8xf32>
    %77 = arith.addf %71, %76 : vector<8x8xf32>
    %78 = vector.extract_strided_slice %46 {offsets = [0, 5], sizes = [8, 1], strides = [1, 1]} : vector<8x15xf32> to vector<8x1xf32>
    %cst_17 = arith.constant 0.000000e+00 : f32
    %79 = vector.shape_cast %78 : vector<8x1xf32> to vector<8x1xf32>
    %80 = vector.broadcast %79 : vector<8x1xf32> to vector<8x8xf32>
    %81 = vector.broadcast %cst_17 : f32 to vector<8x8xf32>
    %82 = arith.select %22, %80, %81 : vector<8x8xi1>, vector<8x8xf32>
    %83 = arith.addf %77, %82 : vector<8x8xf32>
    %84 = vector.extract_strided_slice %46 {offsets = [0, 6], sizes = [8, 1], strides = [1, 1]} : vector<8x15xf32> to vector<8x1xf32>
    %cst_18 = arith.constant 0.000000e+00 : f32
    %85 = vector.shape_cast %84 : vector<8x1xf32> to vector<8x1xf32>
    %86 = vector.broadcast %85 : vector<8x1xf32> to vector<8x8xf32>
    %87 = vector.broadcast %cst_18 : f32 to vector<8x8xf32>
    %88 = arith.select %24, %86, %87 : vector<8x8xi1>, vector<8x8xf32>
    %89 = arith.addf %83, %88 : vector<8x8xf32>
    %90 = vector.extract_strided_slice %46 {offsets = [0, 7], sizes = [8, 1], strides = [1, 1]} : vector<8x15xf32> to vector<8x1xf32>
    %cst_19 = arith.constant 0.000000e+00 : f32
    %91 = vector.shape_cast %90 : vector<8x1xf32> to vector<8x1xf32>
    %92 = vector.broadcast %91 : vector<8x1xf32> to vector<8x8xf32>
    %93 = vector.broadcast %cst_19 : f32 to vector<8x8xf32>
    %94 = arith.select %26, %92, %93 : vector<8x8xi1>, vector<8x8xf32>
    %95 = arith.addf %89, %94 : vector<8x8xf32>
    %96 = vector.extract_strided_slice %46 {offsets = [0, 8], sizes = [8, 1], strides = [1, 1]} : vector<8x15xf32> to vector<8x1xf32>
    %cst_20 = arith.constant 0.000000e+00 : f32
    %97 = vector.shape_cast %96 : vector<8x1xf32> to vector<8x1xf32>
    %98 = vector.broadcast %97 : vector<8x1xf32> to vector<8x8xf32>
    %99 = vector.broadcast %cst_20 : f32 to vector<8x8xf32>
    %100 = arith.select %28, %98, %99 : vector<8x8xi1>, vector<8x8xf32>
    %101 = arith.addf %95, %100 : vector<8x8xf32>
    %102 = vector.extract_strided_slice %46 {offsets = [0, 9], sizes = [8, 1], strides = [1, 1]} : vector<8x15xf32> to vector<8x1xf32>
    %cst_21 = arith.constant 0.000000e+00 : f32
    %103 = vector.shape_cast %102 : vector<8x1xf32> to vector<8x1xf32>
    %104 = vector.broadcast %103 : vector<8x1xf32> to vector<8x8xf32>
    %105 = vector.broadcast %cst_21 : f32 to vector<8x8xf32>
    %106 = arith.select %30, %104, %105 : vector<8x8xi1>, vector<8x8xf32>
    %107 = arith.addf %101, %106 : vector<8x8xf32>
    %108 = vector.extract_strided_slice %46 {offsets = [0, 10], sizes = [8, 1], strides = [1, 1]} : vector<8x15xf32> to vector<8x1xf32>
    %cst_22 = arith.constant 0.000000e+00 : f32
    %109 = vector.shape_cast %108 : vector<8x1xf32> to vector<8x1xf32>
    %110 = vector.broadcast %109 : vector<8x1xf32> to vector<8x8xf32>
    %111 = vector.broadcast %cst_22 : f32 to vector<8x8xf32>
    %112 = arith.select %32, %110, %111 : vector<8x8xi1>, vector<8x8xf32>
    %113 = arith.addf %107, %112 : vector<8x8xf32>
    %114 = vector.extract_strided_slice %46 {offsets = [0, 11], sizes = [8, 1], strides = [1, 1]} : vector<8x15xf32> to vector<8x1xf32>
    %cst_23 = arith.constant 0.000000e+00 : f32
    %115 = vector.shape_cast %114 : vector<8x1xf32> to vector<8x1xf32>
    %116 = vector.broadcast %115 : vector<8x1xf32> to vector<8x8xf32>
    %117 = vector.broadcast %cst_23 : f32 to vector<8x8xf32>
    %118 = arith.select %34, %116, %117 : vector<8x8xi1>, vector<8x8xf32>
    %119 = arith.addf %113, %118 : vector<8x8xf32>
    %120 = vector.extract_strided_slice %46 {offsets = [0, 12], sizes = [8, 1], strides = [1, 1]} : vector<8x15xf32> to vector<8x1xf32>
    %cst_24 = arith.constant 0.000000e+00 : f32
    %121 = vector.shape_cast %120 : vector<8x1xf32> to vector<8x1xf32>
    %122 = vector.broadcast %121 : vector<8x1xf32> to vector<8x8xf32>
    %123 = vector.broadcast %cst_24 : f32 to vector<8x8xf32>
    %124 = arith.select %36, %122, %123 : vector<8x8xi1>, vector<8x8xf32>
    %125 = arith.addf %119, %124 : vector<8x8xf32>
    %126 = vector.extract_strided_slice %46 {offsets = [0, 13], sizes = [8, 1], strides = [1, 1]} : vector<8x15xf32> to vector<8x1xf32>
    %cst_25 = arith.constant 0.000000e+00 : f32
    %127 = vector.shape_cast %126 : vector<8x1xf32> to vector<8x1xf32>
    %128 = vector.broadcast %127 : vector<8x1xf32> to vector<8x8xf32>
    %129 = vector.broadcast %cst_25 : f32 to vector<8x8xf32>
    %130 = arith.select %38, %128, %129 : vector<8x8xi1>, vector<8x8xf32>
    %131 = arith.addf %125, %130 : vector<8x8xf32>
    %132 = vector.extract_strided_slice %46 {offsets = [0, 14], sizes = [8, 1], strides = [1, 1]} : vector<8x15xf32> to vector<8x1xf32>
    %cst_26 = arith.constant 0.000000e+00 : f32
    %133 = vector.shape_cast %132 : vector<8x1xf32> to vector<8x1xf32>
    %134 = vector.broadcast %133 : vector<8x1xf32> to vector<8x8xf32>
    %135 = vector.broadcast %cst_26 : f32 to vector<8x8xf32>
    %136 = arith.select %40, %134, %135 : vector<8x8xi1>, vector<8x8xf32>
    %137 = arith.addf %131, %136 : vector<8x8xf32>
    %138 = arith.addf %45, %137 : vector<8x8xf32>
    %cst_27 = arith.constant dense<0xFF800000> : vector<8xf32>
    %139 = vector.multi_reduction <maximumf>, %138, %cst_27 [1] : vector<8x8xf32> to vector<8xf32>
    %140 = vector.shape_cast %139 : vector<8xf32> to vector<8x1xf32>
    %141 = vector.broadcast %140 : vector<8x1xf32> to vector<8x8xf32>
    %142 = arith.subf %138, %141 : vector<8x8xf32>
    %143 = math.exp %142 : vector<8x8xf32>
    %cst_28 = arith.constant dense<0.000000e+00> : vector<8xf32>
    %144 = vector.multi_reduction <add>, %143, %cst_28 [1] : vector<8x8xf32> to vector<8xf32>
    %145 = vector.shape_cast %144 : vector<8xf32> to vector<8x1xf32>
    %146 = tpu.reciprocal %145 {approx = true} : vector<8x1xf32> -> vector<8x1xf32>
    %147 = vector.broadcast %146 : vector<8x1xf32> to vector<8x8xf32>
    %148 = arith.mulf %143, %147 : vector<8x8xf32>
    %cst_29 = arith.constant dense<0.000000e+00> : vector<8x32xf32>
    %149 = tpu.matmul %148, %43, %cst_29 {dimension_numbers = #tpu.dot_dimension_numbers<[1], [0], [0], [1], [0, 0, 1, 1], [], []>} : vector<8x8xf32>, vector<8x32xf32>, vector<8x32xf32> -> vector<8x32xf32>
    %150 = vector.extract_strided_slice %3 {offsets = [0, 128], sizes = [8, 32], strides = [1, 1]} : vector<8x512xf32> to vector<8x32xf32>
    %151 = vector.extract_strided_slice %3 {offsets = [0, 160], sizes = [8, 32], strides = [1, 1]} : vector<8x512xf32> to vector<8x32xf32>
    %152 = vector.extract_strided_slice %3 {offsets = [0, 192], sizes = [8, 32], strides = [1, 1]} : vector<8x512xf32> to vector<8x32xf32>
    %153 = vector.extract_strided_slice %3 {offsets = [0, 224], sizes = [8, 32], strides = [1, 1]} : vector<8x512xf32> to vector<8x32xf32>
    "tpu.trace_start"() <{level = 10 : i32, message = "iq,jq->ij"}> : () -> ()
    %cst_30 = arith.constant dense<0.000000e+00> : vector<8x8xf32>
    %154 = tpu.matmul %150, %151, %cst_30 {dimension_numbers = #tpu.dot_dimension_numbers<[1], [1], [0], [0], [0, 0, 1, 0], [], []>} : vector<8x32xf32>, vector<8x32xf32>, vector<8x8xf32> -> vector<8x8xf32>
    "tpu.trace_stop"() : () -> ()
    "tpu.trace_start"() <{level = 10 : i32, message = "iq,rq->ir"}> : () -> ()
    %cst_31 = arith.constant dense<0.000000e+00> : vector<8x15xf32>
    %155 = tpu.matmul %153, %4, %cst_31 {dimension_numbers = #tpu.dot_dimension_numbers<[1], [1], [0], [0], [0, 0, 1, 0], [], []>} : vector<8x32xf32>, vector<15x32xf32>, vector<8x15xf32> -> vector<8x15xf32>
    %cst_32 = arith.constant 0.000000e+00 : f32
    "tpu.trace_stop"() : () -> ()
    %156 = vector.broadcast %cst_32 : f32 to vector<8x8xf32>
    %157 = vector.extract_strided_slice %155 {offsets = [0, 0], sizes = [8, 1], strides = [1, 1]} : vector<8x15xf32> to vector<8x1xf32>
    %cst_33 = arith.constant 0.000000e+00 : f32
    %158 = vector.shape_cast %157 : vector<8x1xf32> to vector<8x1xf32>
    %159 = vector.broadcast %158 : vector<8x1xf32> to vector<8x8xf32>
    %160 = vector.broadcast %cst_33 : f32 to vector<8x8xf32>
    %161 = arith.select %12, %159, %160 : vector<8x8xi1>, vector<8x8xf32>
    %162 = arith.addf %156, %161 : vector<8x8xf32>
    %163 = vector.extract_strided_slice %155 {offsets = [0, 1], sizes = [8, 1], strides = [1, 1]} : vector<8x15xf32> to vector<8x1xf32>
    %cst_34 = arith.constant 0.000000e+00 : f32
    %164 = vector.shape_cast %163 : vector<8x1xf32> to vector<8x1xf32>
    %165 = vector.broadcast %164 : vector<8x1xf32> to vector<8x8xf32>
    %166 = vector.broadcast %cst_34 : f32 to vector<8x8xf32>
    %167 = arith.select %14, %165, %166 : vector<8x8xi1>, vector<8x8xf32>
    %168 = arith.addf %162, %167 : vector<8x8xf32>
    %169 = vector.extract_strided_slice %155 {offsets = [0, 2], sizes = [8, 1], strides = [1, 1]} : vector<8x15xf32> to vector<8x1xf32>
    %cst_35 = arith.constant 0.000000e+00 : f32
    %170 = vector.shape_cast %169 : vector<8x1xf32> to vector<8x1xf32>
    %171 = vector.broadcast %170 : vector<8x1xf32> to vector<8x8xf32>
    %172 = vector.broadcast %cst_35 : f32 to vector<8x8xf32>
    %173 = arith.select %16, %171, %172 : vector<8x8xi1>, vector<8x8xf32>
    %174 = arith.addf %168, %173 : vector<8x8xf32>
    %175 = vector.extract_strided_slice %155 {offsets = [0, 3], sizes = [8, 1], strides = [1, 1]} : vector<8x15xf32> to vector<8x1xf32>
    %cst_36 = arith.constant 0.000000e+00 : f32
    %176 = vector.shape_cast %175 : vector<8x1xf32> to vector<8x1xf32>
    %177 = vector.broadcast %176 : vector<8x1xf32> to vector<8x8xf32>
    %178 = vector.broadcast %cst_36 : f32 to vector<8x8xf32>
    %179 = arith.select %18, %177, %178 : vector<8x8xi1>, vector<8x8xf32>
    %180 = arith.addf %174, %179 : vector<8x8xf32>
    %181 = vector.extract_strided_slice %155 {offsets = [0, 4], sizes = [8, 1], strides = [1, 1]} : vector<8x15xf32> to vector<8x1xf32>
    %cst_37 = arith.constant 0.000000e+00 : f32
    %182 = vector.shape_cast %181 : vector<8x1xf32> to vector<8x1xf32>
    %183 = vector.broadcast %182 : vector<8x1xf32> to vector<8x8xf32>
    %184 = vector.broadcast %cst_37 : f32 to vector<8x8xf32>
    %185 = arith.select %20, %183, %184 : vector<8x8xi1>, vector<8x8xf32>
    %186 = arith.addf %180, %185 : vector<8x8xf32>
    %187 = vector.extract_strided_slice %155 {offsets = [0, 5], sizes = [8, 1], strides = [1, 1]} : vector<8x15xf32> to vector<8x1xf32>
    %cst_38 = arith.constant 0.000000e+00 : f32
    %188 = vector.shape_cast %187 : vector<8x1xf32> to vector<8x1xf32>
    %189 = vector.broadcast %188 : vector<8x1xf32> to vector<8x8xf32>
    %190 = vector.broadcast %cst_38 : f32 to vector<8x8xf32>
    %191 = arith.select %22, %189, %190 : vector<8x8xi1>, vector<8x8xf32>
    %192 = arith.addf %186, %191 : vector<8x8xf32>
    %193 = vector.extract_strided_slice %155 {offsets = [0, 6], sizes = [8, 1], strides = [1, 1]} : vector<8x15xf32> to vector<8x1xf32>
    %cst_39 = arith.constant 0.000000e+00 : f32
    %194 = vector.shape_cast %193 : vector<8x1xf32> to vector<8x1xf32>
    %195 = vector.broadcast %194 : vector<8x1xf32> to vector<8x8xf32>
    %196 = vector.broadcast %cst_39 : f32 to vector<8x8xf32>
    %197 = arith.select %24, %195, %196 : vector<8x8xi1>, vector<8x8xf32>
    %198 = arith.addf %192, %197 : vector<8x8xf32>
    %199 = vector.extract_strided_slice %155 {offsets = [0, 7], sizes = [8, 1], strides = [1, 1]} : vector<8x15xf32> to vector<8x1xf32>
    %cst_40 = arith.constant 0.000000e+00 : f32
    %200 = vector.shape_cast %199 : vector<8x1xf32> to vector<8x1xf32>
    %201 = vector.broadcast %200 : vector<8x1xf32> to vector<8x8xf32>
    %202 = vector.broadcast %cst_40 : f32 to vector<8x8xf32>
    %203 = arith.select %26, %201, %202 : vector<8x8xi1>, vector<8x8xf32>
    %204 = arith.addf %198, %203 : vector<8x8xf32>
    %205 = vector.extract_strided_slice %155 {offsets = [0, 8], sizes = [8, 1], strides = [1, 1]} : vector<8x15xf32> to vector<8x1xf32>
    %cst_41 = arith.constant 0.000000e+00 : f32
    %206 = vector.shape_cast %205 : vector<8x1xf32> to vector<8x1xf32>
    %207 = vector.broadcast %206 : vector<8x1xf32> to vector<8x8xf32>
    %208 = vector.broadcast %cst_41 : f32 to vector<8x8xf32>
    %209 = arith.select %28, %207, %208 : vector<8x8xi1>, vector<8x8xf32>
    %210 = arith.addf %204, %209 : vector<8x8xf32>
    %211 = vector.extract_strided_slice %155 {offsets = [0, 9], sizes = [8, 1], strides = [1, 1]} : vector<8x15xf32> to vector<8x1xf32>
    %cst_42 = arith.constant 0.000000e+00 : f32
    %212 = vector.shape_cast %211 : vector<8x1xf32> to vector<8x1xf32>
    %213 = vector.broadcast %212 : vector<8x1xf32> to vector<8x8xf32>
    %214 = vector.broadcast %cst_42 : f32 to vector<8x8xf32>
    %215 = arith.select %30, %213, %214 : vector<8x8xi1>, vector<8x8xf32>
    %216 = arith.addf %210, %215 : vector<8x8xf32>
    %217 = vector.extract_strided_slice %155 {offsets = [0, 10], sizes = [8, 1], strides = [1, 1]} : vector<8x15xf32> to vector<8x1xf32>
    %cst_43 = arith.constant 0.000000e+00 : f32
    %218 = vector.shape_cast %217 : vector<8x1xf32> to vector<8x1xf32>
    %219 = vector.broadcast %218 : vector<8x1xf32> to vector<8x8xf32>
    %220 = vector.broadcast %cst_43 : f32 to vector<8x8xf32>
    %221 = arith.select %32, %219, %220 : vector<8x8xi1>, vector<8x8xf32>
    %222 = arith.addf %216, %221 : vector<8x8xf32>
    %223 = vector.extract_strided_slice %155 {offsets = [0, 11], sizes = [8, 1], strides = [1, 1]} : vector<8x15xf32> to vector<8x1xf32>
    %cst_44 = arith.constant 0.000000e+00 : f32
    %224 = vector.shape_cast %223 : vector<8x1xf32> to vector<8x1xf32>
    %225 = vector.broadcast %224 : vector<8x1xf32> to vector<8x8xf32>
    %226 = vector.broadcast %cst_44 : f32 to vector<8x8xf32>
    %227 = arith.select %34, %225, %226 : vector<8x8xi1>, vector<8x8xf32>
    %228 = arith.addf %222, %227 : vector<8x8xf32>
    %229 = vector.extract_strided_slice %155 {offsets = [0, 12], sizes = [8, 1], strides = [1, 1]} : vector<8x15xf32> to vector<8x1xf32>
    %cst_45 = arith.constant 0.000000e+00 : f32
    %230 = vector.shape_cast %229 : vector<8x1xf32> to vector<8x1xf32>
    %231 = vector.broadcast %230 : vector<8x1xf32> to vector<8x8xf32>
    %232 = vector.broadcast %cst_45 : f32 to vector<8x8xf32>
    %233 = arith.select %36, %231, %232 : vector<8x8xi1>, vector<8x8xf32>
    %234 = arith.addf %228, %233 : vector<8x8xf32>
    %235 = vector.extract_strided_slice %155 {offsets = [0, 13], sizes = [8, 1], strides = [1, 1]} : vector<8x15xf32> to vector<8x1xf32>
    %cst_46 = arith.constant 0.000000e+00 : f32
    %236 = vector.shape_cast %235 : vector<8x1xf32> to vector<8x1xf32>
    %237 = vector.broadcast %236 : vector<8x1xf32> to vector<8x8xf32>
    %238 = vector.broadcast %cst_46 : f32 to vector<8x8xf32>
    %239 = arith.select %38, %237, %238 : vector<8x8xi1>, vector<8x8xf32>
    %240 = arith.addf %234, %239 : vector<8x8xf32>
    %241 = vector.extract_strided_slice %155 {offsets = [0, 14], sizes = [8, 1], strides = [1, 1]} : vector<8x15xf32> to vector<8x1xf32>
    %cst_47 = arith.constant 0.000000e+00 : f32
    %242 = vector.shape_cast %241 : vector<8x1xf32> to vector<8x1xf32>
    %243 = vector.broadcast %242 : vector<8x1xf32> to vector<8x8xf32>
    %244 = vector.broadcast %cst_47 : f32 to vector<8x8xf32>
    %245 = arith.select %40, %243, %244 : vector<8x8xi1>, vector<8x8xf32>
    %246 = arith.addf %240, %245 : vector<8x8xf32>
    %247 = arith.addf %154, %246 : vector<8x8xf32>
    %cst_48 = arith.constant dense<0xFF800000> : vector<8xf32>
    %248 = vector.multi_reduction <maximumf>, %247, %cst_48 [1] : vector<8x8xf32> to vector<8xf32>
    %249 = vector.shape_cast %248 : vector<8xf32> to vector<8x1xf32>
    %250 = vector.broadcast %249 : vector<8x1xf32> to vector<8x8xf32>
    %251 = arith.subf %247, %250 : vector<8x8xf32>
    %252 = math.exp %251 : vector<8x8xf32>
    %cst_49 = arith.constant dense<0.000000e+00> : vector<8xf32>
    %253 = vector.multi_reduction <add>, %252, %cst_49 [1] : vector<8x8xf32> to vector<8xf32>
    %254 = vector.shape_cast %253 : vector<8xf32> to vector<8x1xf32>
    %255 = tpu.reciprocal %254 {approx = true} : vector<8x1xf32> -> vector<8x1xf32>
    %256 = vector.broadcast %255 : vector<8x1xf32> to vector<8x8xf32>
    %257 = arith.mulf %252, %256 : vector<8x8xf32>
    %cst_50 = arith.constant dense<0.000000e+00> : vector<8x32xf32>
    %258 = tpu.matmul %257, %152, %cst_50 {dimension_numbers = #tpu.dot_dimension_numbers<[1], [0], [0], [1], [0, 0, 1, 1], [], []>} : vector<8x8xf32>, vector<8x32xf32>, vector<8x32xf32> -> vector<8x32xf32>
    %259 = vector.extract_strided_slice %3 {offsets = [0, 256], sizes = [8, 32], strides = [1, 1]} : vector<8x512xf32> to vector<8x32xf32>
    %260 = vector.extract_strided_slice %3 {offsets = [0, 288], sizes = [8, 32], strides = [1, 1]} : vector<8x512xf32> to vector<8x32xf32>
    %261 = vector.extract_strided_slice %3 {offsets = [0, 320], sizes = [8, 32], strides = [1, 1]} : vector<8x512xf32> to vector<8x32xf32>
    %262 = vector.extract_strided_slice %3 {offsets = [0, 352], sizes = [8, 32], strides = [1, 1]} : vector<8x512xf32> to vector<8x32xf32>
    "tpu.trace_start"() <{level = 10 : i32, message = "iq,jq->ij"}> : () -> ()
    %cst_51 = arith.constant dense<0.000000e+00> : vector<8x8xf32>
    %263 = tpu.matmul %259, %260, %cst_51 {dimension_numbers = #tpu.dot_dimension_numbers<[1], [1], [0], [0], [0, 0, 1, 0], [], []>} : vector<8x32xf32>, vector<8x32xf32>, vector<8x8xf32> -> vector<8x8xf32>
    "tpu.trace_stop"() : () -> ()
    "tpu.trace_start"() <{level = 10 : i32, message = "iq,rq->ir"}> : () -> ()
    %cst_52 = arith.constant dense<0.000000e+00> : vector<8x15xf32>
    %264 = tpu.matmul %262, %4, %cst_52 {dimension_numbers = #tpu.dot_dimension_numbers<[1], [1], [0], [0], [0, 0, 1, 0], [], []>} : vector<8x32xf32>, vector<15x32xf32>, vector<8x15xf32> -> vector<8x15xf32>
    %cst_53 = arith.constant 0.000000e+00 : f32
    "tpu.trace_stop"() : () -> ()
    %265 = vector.broadcast %cst_53 : f32 to vector<8x8xf32>
    %266 = vector.extract_strided_slice %264 {offsets = [0, 0], sizes = [8, 1], strides = [1, 1]} : vector<8x15xf32> to vector<8x1xf32>
    %cst_54 = arith.constant 0.000000e+00 : f32
    %267 = vector.shape_cast %266 : vector<8x1xf32> to vector<8x1xf32>
    %268 = vector.broadcast %267 : vector<8x1xf32> to vector<8x8xf32>
    %269 = vector.broadcast %cst_54 : f32 to vector<8x8xf32>
    %270 = arith.select %12, %268, %269 : vector<8x8xi1>, vector<8x8xf32>
    %271 = arith.addf %265, %270 : vector<8x8xf32>
    %272 = vector.extract_strided_slice %264 {offsets = [0, 1], sizes = [8, 1], strides = [1, 1]} : vector<8x15xf32> to vector<8x1xf32>
    %cst_55 = arith.constant 0.000000e+00 : f32
    %273 = vector.shape_cast %272 : vector<8x1xf32> to vector<8x1xf32>
    %274 = vector.broadcast %273 : vector<8x1xf32> to vector<8x8xf32>
    %275 = vector.broadcast %cst_55 : f32 to vector<8x8xf32>
    %276 = arith.select %14, %274, %275 : vector<8x8xi1>, vector<8x8xf32>
    %277 = arith.addf %271, %276 : vector<8x8xf32>
    %278 = vector.extract_strided_slice %264 {offsets = [0, 2], sizes = [8, 1], strides = [1, 1]} : vector<8x15xf32> to vector<8x1xf32>
    %cst_56 = arith.constant 0.000000e+00 : f32
    %279 = vector.shape_cast %278 : vector<8x1xf32> to vector<8x1xf32>
    %280 = vector.broadcast %279 : vector<8x1xf32> to vector<8x8xf32>
    %281 = vector.broadcast %cst_56 : f32 to vector<8x8xf32>
    %282 = arith.select %16, %280, %281 : vector<8x8xi1>, vector<8x8xf32>
    %283 = arith.addf %277, %282 : vector<8x8xf32>
    %284 = vector.extract_strided_slice %264 {offsets = [0, 3], sizes = [8, 1], strides = [1, 1]} : vector<8x15xf32> to vector<8x1xf32>
    %cst_57 = arith.constant 0.000000e+00 : f32
    %285 = vector.shape_cast %284 : vector<8x1xf32> to vector<8x1xf32>
    %286 = vector.broadcast %285 : vector<8x1xf32> to vector<8x8xf32>
    %287 = vector.broadcast %cst_57 : f32 to vector<8x8xf32>
    %288 = arith.select %18, %286, %287 : vector<8x8xi1>, vector<8x8xf32>
    %289 = arith.addf %283, %288 : vector<8x8xf32>
    %290 = vector.extract_strided_slice %264 {offsets = [0, 4], sizes = [8, 1], strides = [1, 1]} : vector<8x15xf32> to vector<8x1xf32>
    %cst_58 = arith.constant 0.000000e+00 : f32
    %291 = vector.shape_cast %290 : vector<8x1xf32> to vector<8x1xf32>
    %292 = vector.broadcast %291 : vector<8x1xf32> to vector<8x8xf32>
    %293 = vector.broadcast %cst_58 : f32 to vector<8x8xf32>
    %294 = arith.select %20, %292, %293 : vector<8x8xi1>, vector<8x8xf32>
    %295 = arith.addf %289, %294 : vector<8x8xf32>
    %296 = vector.extract_strided_slice %264 {offsets = [0, 5], sizes = [8, 1], strides = [1, 1]} : vector<8x15xf32> to vector<8x1xf32>
    %cst_59 = arith.constant 0.000000e+00 : f32
    %297 = vector.shape_cast %296 : vector<8x1xf32> to vector<8x1xf32>
    %298 = vector.broadcast %297 : vector<8x1xf32> to vector<8x8xf32>
    %299 = vector.broadcast %cst_59 : f32 to vector<8x8xf32>
    %300 = arith.select %22, %298, %299 : vector<8x8xi1>, vector<8x8xf32>
    %301 = arith.addf %295, %300 : vector<8x8xf32>
    %302 = vector.extract_strided_slice %264 {offsets = [0, 6], sizes = [8, 1], strides = [1, 1]} : vector<8x15xf32> to vector<8x1xf32>
    %cst_60 = arith.constant 0.000000e+00 : f32
    %303 = vector.shape_cast %302 : vector<8x1xf32> to vector<8x1xf32>
    %304 = vector.broadcast %303 : vector<8x1xf32> to vector<8x8xf32>
    %305 = vector.broadcast %cst_60 : f32 to vector<8x8xf32>
    %306 = arith.select %24, %304, %305 : vector<8x8xi1>, vector<8x8xf32>
    %307 = arith.addf %301, %306 : vector<8x8xf32>
    %308 = vector.extract_strided_slice %264 {offsets = [0, 7], sizes = [8, 1], strides = [1, 1]} : vector<8x15xf32> to vector<8x1xf32>
    %cst_61 = arith.constant 0.000000e+00 : f32
    %309 = vector.shape_cast %308 : vector<8x1xf32> to vector<8x1xf32>
    %310 = vector.broadcast %309 : vector<8x1xf32> to vector<8x8xf32>
    %311 = vector.broadcast %cst_61 : f32 to vector<8x8xf32>
    %312 = arith.select %26, %310, %311 : vector<8x8xi1>, vector<8x8xf32>
    %313 = arith.addf %307, %312 : vector<8x8xf32>
    %314 = vector.extract_strided_slice %264 {offsets = [0, 8], sizes = [8, 1], strides = [1, 1]} : vector<8x15xf32> to vector<8x1xf32>
    %cst_62 = arith.constant 0.000000e+00 : f32
    %315 = vector.shape_cast %314 : vector<8x1xf32> to vector<8x1xf32>
    %316 = vector.broadcast %315 : vector<8x1xf32> to vector<8x8xf32>
    %317 = vector.broadcast %cst_62 : f32 to vector<8x8xf32>
    %318 = arith.select %28, %316, %317 : vector<8x8xi1>, vector<8x8xf32>
    %319 = arith.addf %313, %318 : vector<8x8xf32>
    %320 = vector.extract_strided_slice %264 {offsets = [0, 9], sizes = [8, 1], strides = [1, 1]} : vector<8x15xf32> to vector<8x1xf32>
    %cst_63 = arith.constant 0.000000e+00 : f32
    %321 = vector.shape_cast %320 : vector<8x1xf32> to vector<8x1xf32>
    %322 = vector.broadcast %321 : vector<8x1xf32> to vector<8x8xf32>
    %323 = vector.broadcast %cst_63 : f32 to vector<8x8xf32>
    %324 = arith.select %30, %322, %323 : vector<8x8xi1>, vector<8x8xf32>
    %325 = arith.addf %319, %324 : vector<8x8xf32>
    %326 = vector.extract_strided_slice %264 {offsets = [0, 10], sizes = [8, 1], strides = [1, 1]} : vector<8x15xf32> to vector<8x1xf32>
    %cst_64 = arith.constant 0.000000e+00 : f32
    %327 = vector.shape_cast %326 : vector<8x1xf32> to vector<8x1xf32>
    %328 = vector.broadcast %327 : vector<8x1xf32> to vector<8x8xf32>
    %329 = vector.broadcast %cst_64 : f32 to vector<8x8xf32>
    %330 = arith.select %32, %328, %329 : vector<8x8xi1>, vector<8x8xf32>
    %331 = arith.addf %325, %330 : vector<8x8xf32>
    %332 = vector.extract_strided_slice %264 {offsets = [0, 11], sizes = [8, 1], strides = [1, 1]} : vector<8x15xf32> to vector<8x1xf32>
    %cst_65 = arith.constant 0.000000e+00 : f32
    %333 = vector.shape_cast %332 : vector<8x1xf32> to vector<8x1xf32>
    %334 = vector.broadcast %333 : vector<8x1xf32> to vector<8x8xf32>
    %335 = vector.broadcast %cst_65 : f32 to vector<8x8xf32>
    %336 = arith.select %34, %334, %335 : vector<8x8xi1>, vector<8x8xf32>
    %337 = arith.addf %331, %336 : vector<8x8xf32>
    %338 = vector.extract_strided_slice %264 {offsets = [0, 12], sizes = [8, 1], strides = [1, 1]} : vector<8x15xf32> to vector<8x1xf32>
    %cst_66 = arith.constant 0.000000e+00 : f32
    %339 = vector.shape_cast %338 : vector<8x1xf32> to vector<8x1xf32>
    %340 = vector.broadcast %339 : vector<8x1xf32> to vector<8x8xf32>
    %341 = vector.broadcast %cst_66 : f32 to vector<8x8xf32>
    %342 = arith.select %36, %340, %341 : vector<8x8xi1>, vector<8x8xf32>
    %343 = arith.addf %337, %342 : vector<8x8xf32>
    %344 = vector.extract_strided_slice %264 {offsets = [0, 13], sizes = [8, 1], strides = [1, 1]} : vector<8x15xf32> to vector<8x1xf32>
    %cst_67 = arith.constant 0.000000e+00 : f32
    %345 = vector.shape_cast %344 : vector<8x1xf32> to vector<8x1xf32>
    %346 = vector.broadcast %345 : vector<8x1xf32> to vector<8x8xf32>
    %347 = vector.broadcast %cst_67 : f32 to vector<8x8xf32>
    %348 = arith.select %38, %346, %347 : vector<8x8xi1>, vector<8x8xf32>
    %349 = arith.addf %343, %348 : vector<8x8xf32>
    %350 = vector.extract_strided_slice %264 {offsets = [0, 14], sizes = [8, 1], strides = [1, 1]} : vector<8x15xf32> to vector<8x1xf32>
    %cst_68 = arith.constant 0.000000e+00 : f32
    %351 = vector.shape_cast %350 : vector<8x1xf32> to vector<8x1xf32>
    %352 = vector.broadcast %351 : vector<8x1xf32> to vector<8x8xf32>
    %353 = vector.broadcast %cst_68 : f32 to vector<8x8xf32>
    %354 = arith.select %40, %352, %353 : vector<8x8xi1>, vector<8x8xf32>
    %355 = arith.addf %349, %354 : vector<8x8xf32>
    %356 = arith.addf %263, %355 : vector<8x8xf32>
    %cst_69 = arith.constant dense<0xFF800000> : vector<8xf32>
    %357 = vector.multi_reduction <maximumf>, %356, %cst_69 [1] : vector<8x8xf32> to vector<8xf32>
    %358 = vector.shape_cast %357 : vector<8xf32> to vector<8x1xf32>
    %359 = vector.broadcast %358 : vector<8x1xf32> to vector<8x8xf32>
    %360 = arith.subf %356, %359 : vector<8x8xf32>
    %361 = math.exp %360 : vector<8x8xf32>
    %cst_70 = arith.constant dense<0.000000e+00> : vector<8xf32>
    %362 = vector.multi_reduction <add>, %361, %cst_70 [1] : vector<8x8xf32> to vector<8xf32>
    %363 = vector.shape_cast %362 : vector<8xf32> to vector<8x1xf32>
    %364 = tpu.reciprocal %363 {approx = true} : vector<8x1xf32> -> vector<8x1xf32>
    %365 = vector.broadcast %364 : vector<8x1xf32> to vector<8x8xf32>
    %366 = arith.mulf %361, %365 : vector<8x8xf32>
    %cst_71 = arith.constant dense<0.000000e+00> : vector<8x32xf32>
    %367 = tpu.matmul %366, %261, %cst_71 {dimension_numbers = #tpu.dot_dimension_numbers<[1], [0], [0], [1], [0, 0, 1, 1], [], []>} : vector<8x8xf32>, vector<8x32xf32>, vector<8x32xf32> -> vector<8x32xf32>
    %368 = vector.extract_strided_slice %3 {offsets = [0, 384], sizes = [8, 32], strides = [1, 1]} : vector<8x512xf32> to vector<8x32xf32>
    %369 = vector.extract_strided_slice %3 {offsets = [0, 416], sizes = [8, 32], strides = [1, 1]} : vector<8x512xf32> to vector<8x32xf32>
    %370 = vector.extract_strided_slice %3 {offsets = [0, 448], sizes = [8, 32], strides = [1, 1]} : vector<8x512xf32> to vector<8x32xf32>
    %371 = vector.extract_strided_slice %3 {offsets = [0, 480], sizes = [8, 32], strides = [1, 1]} : vector<8x512xf32> to vector<8x32xf32>
    "tpu.trace_start"() <{level = 10 : i32, message = "iq,jq->ij"}> : () -> ()
    %cst_72 = arith.constant dense<0.000000e+00> : vector<8x8xf32>
    %372 = tpu.matmul %368, %369, %cst_72 {dimension_numbers = #tpu.dot_dimension_numbers<[1], [1], [0], [0], [0, 0, 1, 0], [], []>} : vector<8x32xf32>, vector<8x32xf32>, vector<8x8xf32> -> vector<8x8xf32>
    "tpu.trace_stop"() : () -> ()
    "tpu.trace_start"() <{level = 10 : i32, message = "iq,rq->ir"}> : () -> ()
    %cst_73 = arith.constant dense<0.000000e+00> : vector<8x15xf32>
    %373 = tpu.matmul %371, %4, %cst_73 {dimension_numbers = #tpu.dot_dimension_numbers<[1], [1], [0], [0], [0, 0, 1, 0], [], []>} : vector<8x32xf32>, vector<15x32xf32>, vector<8x15xf32> -> vector<8x15xf32>
    %cst_74 = arith.constant 0.000000e+00 : f32
    "tpu.trace_stop"() : () -> ()
    %374 = vector.broadcast %cst_74 : f32 to vector<8x8xf32>
    %375 = vector.extract_strided_slice %373 {offsets = [0, 0], sizes = [8, 1], strides = [1, 1]} : vector<8x15xf32> to vector<8x1xf32>
    %cst_75 = arith.constant 0.000000e+00 : f32
    %376 = vector.shape_cast %375 : vector<8x1xf32> to vector<8x1xf32>
    %377 = vector.broadcast %376 : vector<8x1xf32> to vector<8x8xf32>
    %378 = vector.broadcast %cst_75 : f32 to vector<8x8xf32>
    %379 = arith.select %12, %377, %378 : vector<8x8xi1>, vector<8x8xf32>
    %380 = arith.addf %374, %379 : vector<8x8xf32>
    %381 = vector.extract_strided_slice %373 {offsets = [0, 1], sizes = [8, 1], strides = [1, 1]} : vector<8x15xf32> to vector<8x1xf32>
    %cst_76 = arith.constant 0.000000e+00 : f32
    %382 = vector.shape_cast %381 : vector<8x1xf32> to vector<8x1xf32>
    %383 = vector.broadcast %382 : vector<8x1xf32> to vector<8x8xf32>
    %384 = vector.broadcast %cst_76 : f32 to vector<8x8xf32>
    %385 = arith.select %14, %383, %384 : vector<8x8xi1>, vector<8x8xf32>
    %386 = arith.addf %380, %385 : vector<8x8xf32>
    %387 = vector.extract_strided_slice %373 {offsets = [0, 2], sizes = [8, 1], strides = [1, 1]} : vector<8x15xf32> to vector<8x1xf32>
    %cst_77 = arith.constant 0.000000e+00 : f32
    %388 = vector.shape_cast %387 : vector<8x1xf32> to vector<8x1xf32>
    %389 = vector.broadcast %388 : vector<8x1xf32> to vector<8x8xf32>
    %390 = vector.broadcast %cst_77 : f32 to vector<8x8xf32>
    %391 = arith.select %16, %389, %390 : vector<8x8xi1>, vector<8x8xf32>
    %392 = arith.addf %386, %391 : vector<8x8xf32>
    %393 = vector.extract_strided_slice %373 {offsets = [0, 3], sizes = [8, 1], strides = [1, 1]} : vector<8x15xf32> to vector<8x1xf32>
    %cst_78 = arith.constant 0.000000e+00 : f32
    %394 = vector.shape_cast %393 : vector<8x1xf32> to vector<8x1xf32>
    %395 = vector.broadcast %394 : vector<8x1xf32> to vector<8x8xf32>
    %396 = vector.broadcast %cst_78 : f32 to vector<8x8xf32>
    %397 = arith.select %18, %395, %396 : vector<8x8xi1>, vector<8x8xf32>
    %398 = arith.addf %392, %397 : vector<8x8xf32>
    %399 = vector.extract_strided_slice %373 {offsets = [0, 4], sizes = [8, 1], strides = [1, 1]} : vector<8x15xf32> to vector<8x1xf32>
    %cst_79 = arith.constant 0.000000e+00 : f32
    %400 = vector.shape_cast %399 : vector<8x1xf32> to vector<8x1xf32>
    %401 = vector.broadcast %400 : vector<8x1xf32> to vector<8x8xf32>
    %402 = vector.broadcast %cst_79 : f32 to vector<8x8xf32>
    %403 = arith.select %20, %401, %402 : vector<8x8xi1>, vector<8x8xf32>
    %404 = arith.addf %398, %403 : vector<8x8xf32>
    %405 = vector.extract_strided_slice %373 {offsets = [0, 5], sizes = [8, 1], strides = [1, 1]} : vector<8x15xf32> to vector<8x1xf32>
    %cst_80 = arith.constant 0.000000e+00 : f32
    %406 = vector.shape_cast %405 : vector<8x1xf32> to vector<8x1xf32>
    %407 = vector.broadcast %406 : vector<8x1xf32> to vector<8x8xf32>
    %408 = vector.broadcast %cst_80 : f32 to vector<8x8xf32>
    %409 = arith.select %22, %407, %408 : vector<8x8xi1>, vector<8x8xf32>
    %410 = arith.addf %404, %409 : vector<8x8xf32>
    %411 = vector.extract_strided_slice %373 {offsets = [0, 6], sizes = [8, 1], strides = [1, 1]} : vector<8x15xf32> to vector<8x1xf32>
    %cst_81 = arith.constant 0.000000e+00 : f32
    %412 = vector.shape_cast %411 : vector<8x1xf32> to vector<8x1xf32>
    %413 = vector.broadcast %412 : vector<8x1xf32> to vector<8x8xf32>
    %414 = vector.broadcast %cst_81 : f32 to vector<8x8xf32>
    %415 = arith.select %24, %413, %414 : vector<8x8xi1>, vector<8x8xf32>
    %416 = arith.addf %410, %415 : vector<8x8xf32>
    %417 = vector.extract_strided_slice %373 {offsets = [0, 7], sizes = [8, 1], strides = [1, 1]} : vector<8x15xf32> to vector<8x1xf32>
    %cst_82 = arith.constant 0.000000e+00 : f32
    %418 = vector.shape_cast %417 : vector<8x1xf32> to vector<8x1xf32>
    %419 = vector.broadcast %418 : vector<8x1xf32> to vector<8x8xf32>
    %420 = vector.broadcast %cst_82 : f32 to vector<8x8xf32>
    %421 = arith.select %26, %419, %420 : vector<8x8xi1>, vector<8x8xf32>
    %422 = arith.addf %416, %421 : vector<8x8xf32>
    %423 = vector.extract_strided_slice %373 {offsets = [0, 8], sizes = [8, 1], strides = [1, 1]} : vector<8x15xf32> to vector<8x1xf32>
    %cst_83 = arith.constant 0.000000e+00 : f32
    %424 = vector.shape_cast %423 : vector<8x1xf32> to vector<8x1xf32>
    %425 = vector.broadcast %424 : vector<8x1xf32> to vector<8x8xf32>
    %426 = vector.broadcast %cst_83 : f32 to vector<8x8xf32>
    %427 = arith.select %28, %425, %426 : vector<8x8xi1>, vector<8x8xf32>
    %428 = arith.addf %422, %427 : vector<8x8xf32>
    %429 = vector.extract_strided_slice %373 {offsets = [0, 9], sizes = [8, 1], strides = [1, 1]} : vector<8x15xf32> to vector<8x1xf32>
    %cst_84 = arith.constant 0.000000e+00 : f32
    %430 = vector.shape_cast %429 : vector<8x1xf32> to vector<8x1xf32>
    %431 = vector.broadcast %430 : vector<8x1xf32> to vector<8x8xf32>
    %432 = vector.broadcast %cst_84 : f32 to vector<8x8xf32>
    %433 = arith.select %30, %431, %432 : vector<8x8xi1>, vector<8x8xf32>
    %434 = arith.addf %428, %433 : vector<8x8xf32>
    %435 = vector.extract_strided_slice %373 {offsets = [0, 10], sizes = [8, 1], strides = [1, 1]} : vector<8x15xf32> to vector<8x1xf32>
    %cst_85 = arith.constant 0.000000e+00 : f32
    %436 = vector.shape_cast %435 : vector<8x1xf32> to vector<8x1xf32>
    %437 = vector.broadcast %436 : vector<8x1xf32> to vector<8x8xf32>
    %438 = vector.broadcast %cst_85 : f32 to vector<8x8xf32>
    %439 = arith.select %32, %437, %438 : vector<8x8xi1>, vector<8x8xf32>
    %440 = arith.addf %434, %439 : vector<8x8xf32>
    %441 = vector.extract_strided_slice %373 {offsets = [0, 11], sizes = [8, 1], strides = [1, 1]} : vector<8x15xf32> to vector<8x1xf32>
    %cst_86 = arith.constant 0.000000e+00 : f32
    %442 = vector.shape_cast %441 : vector<8x1xf32> to vector<8x1xf32>
    %443 = vector.broadcast %442 : vector<8x1xf32> to vector<8x8xf32>
    %444 = vector.broadcast %cst_86 : f32 to vector<8x8xf32>
    %445 = arith.select %34, %443, %444 : vector<8x8xi1>, vector<8x8xf32>
    %446 = arith.addf %440, %445 : vector<8x8xf32>
    %447 = vector.extract_strided_slice %373 {offsets = [0, 12], sizes = [8, 1], strides = [1, 1]} : vector<8x15xf32> to vector<8x1xf32>
    %cst_87 = arith.constant 0.000000e+00 : f32
    %448 = vector.shape_cast %447 : vector<8x1xf32> to vector<8x1xf32>
    %449 = vector.broadcast %448 : vector<8x1xf32> to vector<8x8xf32>
    %450 = vector.broadcast %cst_87 : f32 to vector<8x8xf32>
    %451 = arith.select %36, %449, %450 : vector<8x8xi1>, vector<8x8xf32>
    %452 = arith.addf %446, %451 : vector<8x8xf32>
    %453 = vector.extract_strided_slice %373 {offsets = [0, 13], sizes = [8, 1], strides = [1, 1]} : vector<8x15xf32> to vector<8x1xf32>
    %cst_88 = arith.constant 0.000000e+00 : f32
    %454 = vector.shape_cast %453 : vector<8x1xf32> to vector<8x1xf32>
    %455 = vector.broadcast %454 : vector<8x1xf32> to vector<8x8xf32>
    %456 = vector.broadcast %cst_88 : f32 to vector<8x8xf32>
    %457 = arith.select %38, %455, %456 : vector<8x8xi1>, vector<8x8xf32>
    %458 = arith.addf %452, %457 : vector<8x8xf32>
    %459 = vector.extract_strided_slice %373 {offsets = [0, 14], sizes = [8, 1], strides = [1, 1]} : vector<8x15xf32> to vector<8x1xf32>
    %cst_89 = arith.constant 0.000000e+00 : f32
    %460 = vector.shape_cast %459 : vector<8x1xf32> to vector<8x1xf32>
    %461 = vector.broadcast %460 : vector<8x1xf32> to vector<8x8xf32>
    %462 = vector.broadcast %cst_89 : f32 to vector<8x8xf32>
    %463 = arith.select %40, %461, %462 : vector<8x8xi1>, vector<8x8xf32>
    %464 = arith.addf %458, %463 : vector<8x8xf32>
    %465 = arith.addf %372, %464 : vector<8x8xf32>
    %cst_90 = arith.constant dense<0xFF800000> : vector<8xf32>
    %466 = vector.multi_reduction <maximumf>, %465, %cst_90 [1] : vector<8x8xf32> to vector<8xf32>
    %467 = vector.shape_cast %466 : vector<8xf32> to vector<8x1xf32>
    %468 = vector.broadcast %467 : vector<8x1xf32> to vector<8x8xf32>
    %469 = arith.subf %465, %468 : vector<8x8xf32>
    %470 = math.exp %469 : vector<8x8xf32>
    %cst_91 = arith.constant dense<0.000000e+00> : vector<8xf32>
    %471 = vector.multi_reduction <add>, %470, %cst_91 [1] : vector<8x8xf32> to vector<8xf32>
    %472 = vector.shape_cast %471 : vector<8xf32> to vector<8x1xf32>
    %473 = tpu.reciprocal %472 {approx = true} : vector<8x1xf32> -> vector<8x1xf32>
    %474 = vector.broadcast %473 : vector<8x1xf32> to vector<8x8xf32>
    %475 = arith.mulf %470, %474 : vector<8x8xf32>
    %cst_92 = arith.constant dense<0.000000e+00> : vector<8x32xf32>
    %476 = tpu.matmul %475, %370, %cst_92 {dimension_numbers = #tpu.dot_dimension_numbers<[1], [0], [0], [1], [0, 0, 1, 1], [], []>} : vector<8x8xf32>, vector<8x32xf32>, vector<8x32xf32> -> vector<8x32xf32>
    %477 = tpu.concatenate %149, %258, %367, %476 in 1 : vector<8x32xf32>, vector<8x32xf32>, vector<8x32xf32>, vector<8x32xf32> -> vector<8x128xf32>
    %cst_93 = arith.constant dense<0.000000e+00> : vector<1x128xf32>
    %478 = tpu.matmul %5, %477, %cst_93 {dimension_numbers = #tpu.dot_dimension_numbers<[1], [0], [0], [1], [0, 0, 1, 1], [], []>} : vector<1x8xf32>, vector<8x128xf32>, vector<1x128xf32> -> vector<1x128xf32>
    %479 = vector.shape_cast %478 : vector<1x128xf32> to vector<1x1x128xf32>
    %c0_94 = arith.constant 0 : index
    %c0_95 = arith.constant 0 : index
    %c0_96 = arith.constant 0 : index
    %480 = vector.load %arg5[%c0_94, %c0_95, %c0_96] : memref<1x1x128xf32, #tpu.memory_space<vmem>>, vector<1x1x128xf32>
    tpu.vector_store %arg5[%c0_94, %c0_95, %c0_96], %479 {strides = array<i32>} : memref<1x1x128xf32, #tpu.memory_space<vmem>>, vector<1x1x128xf32>,
    return
  }
  func.func @transform_0(%arg0: i32) -> (i32, i32, i32) {
    %c0_i32 = arith.constant 0 : i32
    %c0_i32_0 = arith.constant 0 : i32
    %c0_i32_1 = arith.constant 0 : i32
    return %arg0, %c0_i32, %c0_i32_0 : i32, i32, i32
  }
  func.func @transform_1(%arg0: i32) -> (i32, i32) {
    %c0_i32 = arith.constant 0 : i32
    %c0_i32_0 = arith.constant 0 : i32
    %c0_i32_1 = arith.constant 0 : i32
    return %c0_i32, %c0_i32_0 : i32, i32
  }
  func.func @transform_2(%arg0: i32) -> (i32, i32) {
    %c0_i32 = arith.constant 0 : i32
    %c0_i32_0 = arith.constant 0 : i32
    %c0_i32_1 = arith.constant 0 : i32
    return %c0_i32, %c0_i32_0 : i32, i32
  }
  func.func @transform_3(%arg0: i32) -> (i32, i32) {
    %c0_i32 = arith.constant 0 : i32
    %c0_i32_0 = arith.constant 0 : i32
    %c0_i32_1 = arith.constant 0 : i32
    return %c0_i32, %c0_i32_0 : i32, i32
  }
  func.func @transform_4(%arg0: i32) -> (i32, i32, i32) {
    %c0_i32 = arith.constant 0 : i32
    %c0_i32_0 = arith.constant 0 : i32
    %c0_i32_1 = arith.constant 0 : i32
    return %arg0, %c0_i32, %c0_i32_0 : i32, i32, i32
  }
}

</mosaic_0001>

<bundles_post_ra>
// kernel: tpu_custom_call.1
= control target key start
LH: loop header
LB: loop body
LE: loop exit
PB: predicated region body
PF: predicated region fallthrough
CT: control target
= control target key end

     0   :  { %9 = vsyncpa [#allocation3], 0  ;;  %s3065_s0 = inlined_call_operand.hbm [shape: f32[2,8,32], index: 0, kind: input, shape index: {}]   ;;  %s3066_s1 = inlined_call_operand.hbm [shape: f32[32,512], index: 1, kind: input, shape index: {}]   ;;  %s3067_s2 = inlined_call_operand.hbm [shape: f32[15,32], index: 2, kind: input, shape index: {}]   ;;  %s3068_s3 = inlined_call_operand.vmem [shape: f32[1,8], index: 3, kind: input, shape index: {}]   ;;  %s3069_s4 = inlined_call_operand.hbm [shape: f32[2,1,128], index: 4, kind: output, shape index: {}]  }
   0x1   :  { %11 = vsyncpa [#allocation3 + $0x1], 0 }
   0x2   :  { %12 = vsyncpa [#allocation6], 0 }
   0x3   :  { %13 = vsyncpa [#allocation4], 0 }
   0x4   :  { %15 = vsyncpa [#allocation4 + $0x1], 0  ;;  %s2497_s15 = smov 0   ;;  %s2499_s16 = smov 0  }
   0x5   :  { %s2501_s17 = smov 0   ;;  %s2503_s18 = smov 0  }
   0x6 LB: > { %s2518_s19 = sadd.s32 4294967295, %s2441_s18   ;;  %s1940_s20 = sadd.s32 4294967294, %s2441_s18   ;;  %s2441_s18 = sphi %s2503_s18, %s3112_s18   ;;  %s2437_s17 = sphi %s2501_s17, %s3111_s17   ;;  %s2433_s16 = sphi %s2499_s16, %s3110_s16   ;;  %s2429_s15 = sphi %s2497_s15, %s3109_s15  }
   0x7   : > { %p41_p0 = scmp.ne.s32.totalorder %s2433_s16, %s2429_s15  ;;  %p3070_p1 = scmp.eq.s32.totalorder %s2518_s19, 0 }
   0x8   : > { %p134_p3 = scmp.eq.s32.totalorder %s1940_s20, 1  ;;  %p1941_p5 = scmp.ge.s32.totalorder %s2441_s18, 1 }
   0x9   : > { %p2527_p4 = por %p3070_p1, %p41_p0  ;;  %p141_p7 = scmp.lt.s32.totalorder %s2441_s18, 3 }
   0xa   : > { %p2532_p6 = por %p134_p3, %p41_p0  ;;  %s2443_s24 = smov [#allocation5]  }
   0xb   : > { %s3079_s21 = scalar_select %p2527_p4, 1, 0 }
   0xc   : > { %s3080_s22 = scalar_select %p2532_p6, 1, 0 }
   0xd   : > { %p2537_p8 = pnand %p1941_p5, %p141_p7  ;;  %s153_s25 = sshll.u32 %s2443_s24, 4  ;;  %s2541_s25 = int_to_ptr.vmem [resolvable:$true] %s153_s25 }
   0xe   : > { %s2444_s27 = smov [#allocation7]   ;;  %s2285_s5 = scalar_lea.hbm %s3066_s1, 2048 }
   0xf   : > { %p2128_p9 = pneg %p2537_p8  ;;  %s166_s28 = sshll.u32 %s2444_s27, 4  ;;  %s2552_s28 = int_to_ptr.vmem [resolvable:$true] %s166_s28 }
  0x10   : > { %p2286_p12 = scmp.ne.s32.totalorder %s3066_s1, %s2285_s5  ;;  %p2292_p5 = scmp.lt.u32.totalorder %s2285_s5, %s3066_s1 }
  0x11   : > { %p2548_p11 = pnand %p2128_p9, %p3070_p1 }
  0x13   : > { %p2287_p13 = pneg %p2548_p11 }
  0x15   : > { %p2288_p0 = pnand %p2287_p13, %p2286_p12 }
  0x17   : > { %p2289_p3 = pneg %p2288_p0 }
  0x19   : > { %p2294_p7 = pnand %p2292_p5, %p2289_p3 }
  0x1b   : > { %2297 = shalt.err (!%p2294_p7)
}
  0x1c   : > { %s2298_s10 = scalar_lea.vmem %s2541_s25, 2048  ;;  %p2306_p2 = scmp.lt.s32.totalorder %s2541_s25, %s2541_s25 }
  0x1d   : > { %p2299_p9 = scmp.ne.s32.totalorder %s2541_s25, %s2298_s10  ;;  %p2307_p12 = scmp.lt.s32.totalorder %s2298_s10, %s2298_s10 }
  0x1f   : > { %p2301_p10 = pnand %p2299_p9, %p2287_p13  ;;  %p2308_p0 = por %p2307_p12, %p2306_p2 }
  0x21   : > { %p2302_p1 = pneg %p2301_p10 }
  0x23   : > { %p2309_p6 = pnand %p2308_p0, %p2302_p1 }
  0x25   : > { %2312 = shalt.err (!%p2309_p6)
}
  0x26   : > { %s2445_s11 = smov 512   ;;  %s2446_s12 = smov 32  }
  0x27   : > { %2131 = dma.hbm_to_vmem [thread:$0]  (!%p2548_p11), %s3066_s1, 2048, %s2541_s25, [#allocation6], %s2445_s11, %s2445_s11, %s2446_s12  }
  0x28   : > { %s2313_s27 = scalar_lea.hbm %s3067_s2, 256 }
  0x29   : > { %p2314_p2 = scmp.ne.s32.totalorder %s3067_s2, %s2313_s27  ;;  %p2320_p10 = scmp.lt.u32.totalorder %s2313_s27, %s3067_s2 }
  0x2b   : > { %p2316_p1 = pnand %p2314_p2, %p2287_p13 }
  0x2d   : > { %p2317_p6 = pneg %p2316_p1 }
  0x2f   : > { %p2322_p3 = pnand %p2320_p10, %p2317_p6 }
  0x31   : > { %2325 = shalt.err (!%p2322_p3)
}
  0x32   : > { %s2326_s25 = scalar_lea.vmem %s2552_s28, 256  ;;  %p2334_p12 = scmp.lt.s32.totalorder %s2552_s28, %s2552_s28 }
  0x33   : > { %p2327_p5 = scmp.ne.s32.totalorder %s2552_s28, %s2326_s25  ;;  %p2335_p0 = scmp.lt.s32.totalorder %s2326_s25, %s2326_s25 }
  0x35   : > { %p2329_p7 = pnand %p2327_p5, %p2287_p13  ;;  %p2336_p2 = por %p2335_p0, %p2334_p12 }
  0x37   : > { %p2330_p9 = pneg %p2329_p7 }
  0x39   : > { %p2337_p1 = pnand %p2336_p2, %p2330_p9 }
  0x3b   : > { %2340 = shalt.err (!%p2337_p1)
}
  0x3c   : > { %s2447_s7 = smov 128   ;;  %s2448_s8 = smov 8  }
  0x3d   : > { %2134 = dma.hbm_to_vmem [thread:$0]  (!%p2548_p11), %s3067_s2, 256, %s2552_s28, [#allocation6], %s2447_s7, %s2447_s7, %s2448_s8  }
  0x3e   : > { %s2607_s11 = sadd.s32 1, %s2441_s18   ;;  %s28_s13 = sadd.s32 1, %s2437_s17 }
  0x3f   : > { %s25_s12 = ssub.s32 %s2441_s18, %s2607_s11  ;;  %p35_p6 = scmp.ne.s32.totalorder %s2437_s17, %s2433_s16 }
  0x40   : > { %p26_p13 = scmp.eq.s32.totalorder %s25_s12, 0  ;;  %p36_p10 = scmp.eq.s32.totalorder %s2441_s18, 0 }
  0x41   : > { %p3083_p5 = scmp.eq.s32.totalorder %s2518_s19, 1  ;;  %p2145_p9 = scmp.lt.s32.totalorder %s2441_s18, 2 }
  0x42   : > { %s2616_s14 = scalar_select %p26_p13, %s2437_s17, %s28_s13  }
  0x43   : > { %p37_p3 = por %p36_p10, %p35_p6  ;;  %p2620_p7 = por %p3083_p5, %p35_p6 }
  0x44   : > { %s183_s26 = sand.u32 1, %s2437_s17   ;;  %s1946_s28 = sshll.u32 %s2441_s18, 7 }
  0x45   : > { %s3084_s20 = scalar_select %p2620_p7, 1, 0 }
  0x46   : > { %s1945_s24 = sshll.u32 %s183_s26, 3  ;;  %s2630_s30 = scalar_lea.hbm %s3065_s0, %s1946_s28 }
  0x47   : > { %s187_s5 = scalar_lea.vmem [#allocation2], %s1945_s24  ;;  %p2634_p11 = pnand %p2145_p9, %p37_p3 }
  0x48   : > { %s194_s6 = sshll.u32 %s187_s5, 4  ;;  %s184_s7 = scalar_lea.sflag [#allocation3], %s183_s26  ;;  %s2632_s6 = int_to_ptr.vmem [resolvable:$true] %s194_s6 }
  0x49   : > { %s2341_s8 = scalar_lea.hbm %s2630_s30, 128  ;;  %p2343_p0 = pneg %p2634_p11 }
  0x4a   : > { %p2342_p12 = scmp.ne.s32.totalorder %s2630_s30, %s2341_s8  ;;  %s2346_s12 = scalar_lea.hbm %s3065_s0, 256 }
  0x4b   : > { %p2347_p13 = scmp.lt.u32.totalorder %s2630_s30, %s3065_s0  ;;  %p2348_p6 = scmp.lt.u32.totalorder %s2346_s12, %s2341_s8 }
  0x4c   : > { %p2344_p2 = pnand %p2343_p0, %p2342_p12  ;;  %p2350_p3 = scmp.lt.u32.totalorder %s2341_s8, %s2630_s30 }
  0x4d   : > { %p2349_p10 = por %p2348_p6, %p2347_p13 }
  0x4e   : > { %p2345_p1 = pneg %p2344_p2 }
  0x4f   : > { %p2351_p5 = por %p2350_p3, %p2349_p10 }
  0x51   : > { %p2352_p9 = pnand %p2351_p5, %p2345_p1 }
  0x53   : > { %2355 = shalt.err (!%p2352_p9)
}
  0x54   : > { %s2356_s26 = scalar_lea.vmem %s2632_s6, 128  ;;  %s2449_s28 = smov [#allocation2]  }
  0x55   : > { %p2357_p12 = scmp.ne.s32.totalorder %s2632_s6, %s2356_s26  ;;  %s2361_s27 = sshll.u32 %s2449_s28, 4  ;;  %s2362_s27 = int_to_ptr.vmem [resolvable:$false] %s2361_s27 }
  0x56   : > { %s2363_s29 = scalar_lea.vmem %s2362_s27, 256  ;;  %p2364_p4 = scmp.lt.s32.totalorder %s2632_s6, %s2362_s27 }
  0x57   : > { %p2359_p2 = pnand %p2357_p12, %p2343_p0  ;;  %p2365_p13 = scmp.lt.s32.totalorder %s2363_s29, %s2356_s26 }
  0x59   : > { %p2360_p7 = pneg %p2359_p2  ;;  %p2366_p6 = por %p2365_p13, %p2364_p4 }
  0x5b   : > { %p2367_p10 = pnand %p2366_p6, %p2360_p7 }
  0x5d   : > { %2370 = shalt.err (!%p2367_p10)
}
  0x5e   : > { %2138 = dma.hbm_to_vmem [thread:$0]  (!%p2634_p11), %s2630_s30, 128, %s2632_s6, %s184_s7  }
  0x5f   : > { %203 = sbr.rel (%p2537_p8) target bundleno = 3302 (0xce6), region = 36  ;;  %s2666_s5 = sand.u32 (!%p2537_p8), 1, %s2433_s16  }
  0x60   : > { %s1948_s8 = sshll.u32 (!%p2537_p8), %s2666_s5, 3  ;;  %s206_s9 = scalar_lea.sflag (!%p2537_p8), [#allocation3], %s2666_s5 }
  0x61   : > { %s209_s10 = scalar_lea.vmem (!%p2537_p8), [#allocation2], %s1948_s8  ;;  %p3086_p4 = scmp.ne.s32.totalorder (!%p2537_p8), %s3079_s21, 0 }
  0x66   : > { %2416 = dma.done.wait (%p3086_p4), %s206_s9, 128  }
  0x67   : > { %2418 = vsyncadd (%p3086_p4), %s206_s9, 4294967168  ;;  %p3087_p7 = scmp.eq.s32.totalorder %s2518_s19, 0 }
  0x69   : > { %2420 = dma.done.wait (%p3087_p7), [#allocation6], 2304   ;;  %p3088_p11 = pmov %p3087_p7 }
  0x6a   : > { %v2450_v0 = vmov 0.0   ;;  %v243_v1 = vld [vmem:[#allocation5 + $0x8] sm:$0xff]  ;;  %v242_v3 = vld [vmem:[#allocation5] sm:$0xff]  ;;  %v241_v13 = vld [vmem:[%s209_s10] sm:$0xff]  ;;  %vm258_vm0 = vcmask 261120   ;;  %v2451_v19 = vmov 0.0|0.0   ;;  %v407_v56 = vlaneseq }
  0x6b   : > { %2422 = vsyncadd (%p3088_p11), [#allocation6], 4294964992  ;;  %326 = vmatprep.mubr.f32.mxu0 %v2450_v0  ;;  %397 = vmatprep.mubr.f32.mxu1 %v2450_v0  ;;  %v247_v2 = vld [vmem:[#allocation5 + $0x28] sm:$0xff]  ;;  %v246_v5 = vld [vmem:[#allocation5 + $0x20] sm:$0xff]  ;;  %vm2452_vm1 = vmmov 0   ;;  %v2453_v31 = vmov 2  }
  0x6c   : > { %v2084_v4 = vpack.c.bf16 %v247_v2, %v243_v1  ;;  %v251_v6 = vld [vmem:[#allocation5 + $0x48] sm:$0xff]  ;;  %v2086_v8 = vpack.c.bf16 %v246_v5, %v242_v3  ;;  %v250_v10 = vld [vmem:[#allocation5 + $0x40] sm:$0xff]  ;;  %v245_v14 = vld [vmem:[#allocation5 + $0x18] sm:$0xff]  ;;  %2210 = vset.pattern.permute.xlu0 %v2453_v31  ;;  %v2454_v32 = vmov 0   ;;  %s2455_s21 = smov 32   ;;  %s2456_s23 = smov 96  }
  0x6d   : > { %v255_v7 = vld [vmem:[#allocation5 + $0x68] sm:$0xff]  ;;  %v254_v11 = vld [vmem:[#allocation5 + $0x60] sm:$0xff]  ;;  %v249_v15 = vld [vmem:[#allocation5 + $0x38] sm:$0xff]  ;;  %2208 = vset.pattern.permute.xlu1 %v2454_v32  ;;  %v2457_v41 = vmov 5   ;;  %v2458_v42 = vmov 1   ;;  %v2459_v45 = vmov 8  }
  0x6e   : > { %v2088_v9 = vpack.c.bf16 %v255_v7, %v251_v6  ;;  %2085 = vmatprep.subr.bf16.mxu0 %v2084_v4  ;;  %v2090_v12 = vpack.c.bf16 %v254_v11, %v250_v10  ;;  %v244_v16 = vld [vmem:[#allocation5 + $0x10] sm:$0xff]  ;;  %v2092_v17 = vpack.c.bf16 %v249_v15, %v245_v14  ;;  %v404_v20 = vld [vmem:[#allocation7] sm:$0xff]  ;;  %v405_v21 = vld [vmem:[#allocation7 + $0x8] sm:$0x7f]  ;;  %v2460_v46 = vmov 3   ;;  %s2470_s30 = smov 64  }
  0x6f   : > { %2087 = vmatpush1.bf16.msra.mxu0 %v2086_v8  ;;  %v248_v18 = vld [vmem:[#allocation5 + $0x30] sm:$0xff]  ;;  %v2684_v23 = vpack.c.bf16 %v405_v21, %v404_v20  ;;  %vm2688_vm2 = vmpackc.low %vm258_vm0, %vm258_vm0  ;;  %v253_v25 = vld [vmem:[#allocation5 + $0x58] sm:$0xff]  ;;  %v2461_v47 = vmov 11   ;;  %v2462_v48 = vmov 4   ;;  %v2463_v49 = vmov 14   ;;  %s240_s7 = scalar_lea.vmem [#allocation8], %s2666_s5 }
  0x70   : > { %2089 = vmatprep.subr.bf16.mxu0 %v2088_v9  ;;  %v2094_v22 = vpack.c.bf16 %v248_v18, %v244_v16  ;;  %v257_v26 = vld [vmem:[#allocation5 + $0x78] sm:$0xff]  ;;  %2093 = vmatprep.subr.bf16.mxu1 %v2092_v17  ;;  %v252_v28 = vld [vmem:[#allocation5 + $0x50] sm:$0xff]  ;;  %v2464_v50 = vmov 6   ;;  %v2465_v51 = vmov 7   ;;  %v2466_v52 = vmov 9   ;;  %s1855_s12 = sshll.u32 %s240_s7, 4  ;;  %s3018_s12 = int_to_ptr.vmem [resolvable:$true] %s1855_s12 }
  0x71   : > { %v2096_v27 = vpack.c.bf16 %v257_v26, %v253_v25  ;;  %v256_v29 = vld [vmem:[#allocation5 + $0x70] sm:$0xff]  ;;  %v2467_v53 = vmov 10   ;;  %v2468_v54 = vmov 12   ;;  %v2469_v55 = vmov 13   ;;  %s1978_s13 = sshll.u32 %s2518_s19, 4  ;;  %s1843_s27 = scalar_lea.sflag [#allocation4], %s2666_s5 }
  0x72   : > { %2095 = vmatpush1.bf16.msra.mxu1 %v2094_v22  ;;  %v2098_v30 = vpack.c.bf16 %v256_v29, %v252_v28  ;;  %v408_v57 = vshrl.u32 %v407_v56, 7  ;;  %v410_v58 = vand.u32 127, %v407_v56  ;;  %s3023_s28 = scalar_lea.hbm %s3069_s4, %s1978_s13  ;;  %s2371_s29 = scalar_lea.vmem %s3018_s12, 16 }
  0x73   : > { %2091 = vmatpush1.bf16.msra.mxu0 %v2090_v12  ;;  %2097 = vmatprep.subr.bf16.mxu1 %v2096_v27  ;;  %p2372_p8 = scmp.ne.s32.totalorder %s3018_s12, %s2371_s29  ;;  %p3106_p0 = scmp.ne.s32.totalorder %s3084_s20, 0 }
  0x74   : > { %2100 = vmatprep.subr.bf16.mxu0 %v2451_v19  ;;  %v411_v59 = vsub.s32 %v410_v58, %v408_v57  ;;  %s2471_s19 = smov [#allocation8]  }
  0x75   : > { %p2373_p1 = pnand %p2372_p8, %p3106_p0  ;;  %s2375_s8 = sshll.u32 %s2471_s19, 4  ;;  %s2376_s8 = int_to_ptr.vmem [resolvable:$false] %s2375_s8 }
  0x76   : > { %1951 = vmatmul.mubr.msk.f32.vlgmr.msra.gmra.mrb[0].mxu0 %vm258_vm0, %v241_v13  ;;  %2099 = vmatpush1.bf16.msra.mxu1 %v2098_v30  ;;  %v2746_v60 = vadd.s32 7, %v411_v59  ;;  %s2377_s9 = scalar_lea.vmem %s2376_s8, 32  ;;  %p2378_p5 = scmp.lt.s32.totalorder %s3018_s12, %s2376_s8 }
  0x77   : > { %2015 = vmatprep.mubr.msk.f32.mxu0 %vm2452_vm1, %v2450_v0  ;;  %2018 = vmatprep.subr.mxu1 %v2450_v0  ;;  %p2374_p3 = pneg %p2373_p1  ;;  %p2379_p9 = scmp.lt.s32.totalorder %s2377_s9, %s2371_s29 }
  0x78   : > { %vm413_vm3 = vcmp.eq.s32.totalorder %v2746_v60, 0  ;;  %vm414_vm4 = vcmp.eq.s32.totalorder %v2746_v60, 1  ;;  %vm415_vm5 = vcmp.eq.s32.totalorder %v2746_v60, 2  ;;  %vm3077_vm6 = vcmp.eq.s32.totalorder %v2746_v60, 3 }
  0x79   : > { %1952 = vmatmul.mubr.msk.f32.vlgmr.msra.gmra.mrb[0].mxu1 %vm258_vm0, %v241_v13  ;;  %vm3076_vm7 = vcmp.eq.s32.totalorder %v2746_v60, 4  ;;  %vm418_vm8 = vcmp.eq.s32.totalorder %v2746_v60, 5  ;;  %vm419_vm9 = vcmp.eq.s32.totalorder %v2746_v60, 6  ;;  %vm3078_vm10 = vcmp.eq.s32.totalorder %v2746_v60, 7  ;;  %p2380_p12 = por %p2379_p9, %p2378_p5 }
  0x7a   : > { %2020 = vmatprep.mubr.msk.f32.mxu1 %vm2452_vm1, %v2450_v0  ;;  %vm3074_vm11 = vcmp.eq.s32.totalorder %v2746_v60, 8  ;;  %vm3073_vm12 = vcmp.eq.s32.totalorder %v2746_v60, 9  ;;  %vm423_vm13 = vcmp.eq.s32.totalorder %v2746_v60, 10  ;;  %vm3075_vm14 = vcmp.eq.s32.totalorder %v2746_v60, 11 }
  0x7b   : > { %vm425_vm15 = vcmp.eq.s32.totalorder %v2746_v60, 12  ;;  %p2381_p2 = pnand %p2380_p12, %p2374_p3 }
  0x7c   : > { %2103 = vmatpush3.bf16.xpose.msk.msra.mxu0 %vm2688_vm2, %v2684_v23 }
  0x7d   : > { %2104 = vmatprep.subr.bf16.mxu0 %v2451_v19 }
 0x149   : > { %v2702_v33 = vpop.f32.mrb[0].mxu0 }
 0x14a   : > { %429 = vrot.lane.b32.xlu0 %v2702_v33, %s2455_s21  ;;  %v2706_v34 = vpop.f32.mrb[1].mxu0 }
 0x14c   : > { %v2723_v37 = vpop.f32.mrb[0].mxu1 }
 0x14d   : > { %v2725_v38 = vpop.f32.mrb[1].mxu1 }
 0x14e   : > { %600 = vrot.lane.b32.xlu0 %v2702_v33, %s2456_s23 }
 0x1bc   : > { %v430_v35 = vpop.permute.xlu0 %429 }
 0x1bd   : > { %2016 = vmatmul.mubr.msk.f32.vlgmr.msra.gmra.mrb[2].mxu0 %vm258_vm0, %v430_v35 }
 0x1be   : > { %2107 = vmatpush3.bf16.xpose.msk.msra.mxu0 %vm2688_vm2, %v2684_v23  ;;  %2032 = vmatprep.mubr.msk.f32.mxu0 %vm2452_vm1, %v2450_v0 }
 0x1bf   : > { %2108 = vmatprep.subr.bf16.mxu0 %v2451_v19 }
 0x1c0   : > { %v601_v36 = vpop.permute.xlu0 %600 }
 0x1c1   : > { %2019 = vmatpush3.xpose.msk.msra.mxu1 %vm258_vm0, %v601_v36 }
 0x1c2   : > { %2023 = vmatprep.subr.mxu1 %v2450_v0 }
 0x1c4   : > { %2021 = vmatmul.mubr.msk.f32.vlgmr.msra.gmra.mrb[2].mxu1 %vm258_vm0, %v2702_v33 }
 0x1c5   : > { %2025 = vmatprep.mubr.msk.f32.mxu1 %vm2452_vm1, %v2450_v0 }
 0x290   : > { %v505_v39 = vpop.f32.mrb[2].mxu0 }
 0x291   : > { %523 = vperm.xlu0 %2210, %v505_v39   ;;  %511 = vperm.xlu1 %2208, %v505_v39   ;;  %v2017_v40 = vpop.f32.mrb[3].mxu0 }
 0x295   : > { %2213 = vset.pattern.permute.xlu0 %v2457_v41  ;;  %2209 = vset.pattern.permute.xlu1 %v2458_v42 }
 0x296   : > { %541 = vperm.xlu0 %2213, %v505_v39   ;;  %517 = vperm.xlu1 %2209, %v505_v39  }
 0x297   : > { %v2729_v43 = vpop.f32.mrb[2].mxu1 }
 0x298   : > { %v2022_v44 = vpop.f32.mrb[3].mxu1 }
 0x29a   : > { %2216 = vset.pattern.permute.xlu0 %v2459_v45  ;;  %2211 = vset.pattern.permute.xlu1 %v2460_v46 }
 0x29b   : > { %559 = vperm.xlu0 %2216, %v505_v39   ;;  %529 = vperm.xlu1 %2211, %v505_v39  }
 0x29f   : > { %2219 = vset.pattern.permute.xlu0 %v2461_v47  ;;  %2212 = vset.pattern.permute.xlu1 %v2462_v48 }
 0x2a0   : > { %577 = vperm.xlu0 %2219, %v505_v39   ;;  %535 = vperm.xlu1 %2212, %v505_v39  }
 0x2a4   : > { %2222 = vset.pattern.permute.xlu0 %v2463_v49  ;;  %2214 = vset.pattern.permute.xlu1 %v2464_v50 }
 0x2a5   : > { %595 = vperm.xlu0 %2222, %v505_v39   ;;  %547 = vperm.xlu1 %2214, %v505_v39  }
 0x2a9   : > { %765 = vrot.lane.b32.xlu0 %v2706_v34, %s2455_s21  ;;  %2215 = vset.pattern.permute.xlu1 %v2465_v51 }
 0x2aa   : > { %553 = vperm.xlu1 %2215, %v505_v39   ;;  %2226 = vset.pattern.permute.xlu0 %v2460_v46 }
 0x2ae   : > { %2217 = vset.pattern.permute.xlu1 %v2466_v52 }
 0x2af   : > { %565 = vperm.xlu1 %2217, %v505_v39  }
 0x2b3   : > { %2218 = vset.pattern.permute.xlu1 %v2467_v53 }
 0x2b4   : > { %571 = vperm.xlu1 %2218, %v505_v39  }
 0x2b8   : > { %2220 = vset.pattern.permute.xlu1 %v2468_v54 }
 0x2b9   : > { %583 = vperm.xlu1 %2220, %v505_v39  }
 0x2bd   : > { %2221 = vset.pattern.permute.xlu1 %v2469_v55 }
 0x2be   : > { %589 = vperm.xlu1 %2221, %v505_v39  }
 0x2c2   : > { %2223 = vset.pattern.permute.xlu1 %v2454_v32 }
 0x310   : > { %v524_v61 = vpop.permute.xlu0 %523  ;;  %v512_v62 = vpop.permute.xlu1 %511 }
 0x311   : > { %v514_v2 = vsel %vm413_vm3, %v512_v62, 0.0  ;;  %v526_v5 = vsel %vm415_vm5, %v524_v61, 0.0 }
 0x315   : > { %v542_v63 = vpop.permute.xlu0 %541  ;;  %v518_v1 = vpop.permute.xlu1 %517 }
 0x316   : > { %v520_v3 = vsel %vm414_vm4, %v518_v1, 0.0  ;;  %v544_v15 = vsel %vm418_vm8, %v542_v63, 0.0 }
 0x317   : > { %v521_v4 = vadd.f32 %v520_v3, %v514_v2 }
 0x319   : > { %v527_v8 = vadd.f32 %v526_v5, %v521_v4 }
 0x31a   : > { %v560_v6 = vpop.permute.xlu0 %559  ;;  %v530_v7 = vpop.permute.xlu1 %529 }
 0x31b   : > { %v532_v9 = vsel %vm3077_vm6, %v530_v7, 0.0  ;;  %v562_v28 = vsel %vm3074_vm11, %v560_v6, 0.0  ;;  %vm427_vm11 = vcmp.eq.s32.totalorder %v2746_v60, 14 }
 0x31c   : > { %v533_v10 = vadd.f32 %v532_v9, %v527_v8 }
 0x31f   : > { %v578_v11 = vpop.permute.xlu0 %577  ;;  %v536_v12 = vpop.permute.xlu1 %535 }
 0x320   : > { %v538_v13 = vsel %vm3076_vm7, %v536_v12, 0.0  ;;  %v580_v44 = vsel %vm3075_vm14, %v578_v11, 0.0  ;;  %vm676_vm14 = vcmask 64512  }
 0x321   : > { %v539_v14 = vadd.f32 %v538_v13, %v533_v10 }
 0x323   : > { %v545_v18 = vadd.f32 %v544_v15, %v539_v14 }
 0x324   : > { %v596_v16 = vpop.permute.xlu0 %595  ;;  %v548_v17 = vpop.permute.xlu1 %547 }
 0x325   : > { %v550_v20 = vsel %vm419_vm9, %v548_v17, 0.0  ;;  %v598_v1 = vsel %vm427_vm11, %v596_v16, 0.0 }
 0x326   : > { %v551_v22 = vadd.f32 %v550_v20, %v545_v18 }
 0x328   : > { %v766_v21 = vpop.permute.xlu0 %765 }
 0x329   : > { %2033 = vmatmul.mubr.msk.f32.vlgmr.msra.gmra.mrb[4].mxu0 %vm258_vm0, %v766_v21  ;;  %v554_v25 = vpop.permute.xlu1 %553 }
 0x32a   : > { %v556_v26 = vsel %vm3078_vm10, %v554_v25, 0.0  ;;  %2111 = vmatpush3.bf16.xpose.msk.msra.mxu0 %vm2688_vm2, %v2684_v23  ;;  %2049 = vmatprep.mubr.msk.f32.mxu0 %vm2452_vm1, %v2450_v0 }
 0x32b   : > { %v557_v27 = vadd.f32 %v556_v26, %v551_v22  ;;  %2112 = vmatprep.subr.bf16.mxu0 %v2451_v19 }
 0x32d   : > { %v563_v30 = vadd.f32 %v562_v28, %v557_v27 }
 0x32e   : > { %v566_v29 = vpop.permute.xlu1 %565 }
 0x32f   : > { %v568_v35 = vsel %vm3073_vm12, %v566_v29, 0.0  ;;  %vm426_vm12 = vcmp.eq.s32.totalorder %v2746_v60, 13 }
 0x330   : > { %v569_v36 = vadd.f32 %v568_v35, %v563_v30 }
 0x333   : > { %v572_v39 = vpop.permute.xlu1 %571 }
 0x334   : > { %v574_v40 = vsel %vm423_vm13, %v572_v39, 0.0 }
 0x335   : > { %v575_v19 = vadd.f32 %v574_v40, %v569_v36 }
 0x337   : > { %v581_v57 = vadd.f32 %v580_v44, %v575_v19 }
 0x338   : > { %v584_v56 = vpop.permute.xlu1 %583 }
 0x339   : > { %v586_v58 = vsel %vm425_vm15, %v584_v56, 0.0 }
 0x33a   : > { %v587_v59 = vadd.f32 %v586_v58, %v581_v57 }
 0x33d   : > { %v590_v61 = vpop.permute.xlu1 %589 }
 0x33e   : > { %v592_v62 = vsel %vm426_vm12, %v590_v61, 0.0 }
 0x33f   : > { %v593_v63 = vadd.f32 %v592_v62, %v587_v59 }
 0x341   : > { %v599_v2 = vadd.f32 %v598_v1, %v593_v63 }
 0x343   : > { %v673_v3 = vadd.f32 %v2729_v43, %v599_v2 }
 0x345   : > { %v677_v4 = vsel %vm676_vm14, %v673_v3, -inf }
 0x346   : > { %678 = vmax.xlane.f32.xlu1 %v677_v4 }
 0x357   : > { %688 = vrot.lane.b32.xlu1 %v2702_v33, %s2470_s30 }
 0x3d3   : > { %v679_v5 = vpop.xlane.xlu1 %678 }
 0x3d4   : > { %v680_v6 = vsub.f32 %v673_v3, %v679_v5 }
 0x3d6   : > { %v681_v7 = vmul.f32 1.442695, %v680_v6 }
 0x3d7   : > { %v689_v8 = vpop.permute.xlu1 %688 }
 0x3d8   : > { %2269 = vpow2.f32 %v681_v7  ;;  %2024 = vmatpush3.msra.mxu1 %v689_v8 }
 0x3d9   : > { %2035 = vmatprep.subr.mxu1 %v2450_v0 }
 0x3e2   : > { %v2270_v9 = vpop.eup %2269 }
 0x3e3   : > { %v683_v10 = vsel %vm676_vm14, %v2270_v9, 0.0 }
 0x3e4   : > { %684 = vadd.xlane.f32.xlu0 %v683_v10 }
 0x3fa   : > { %930 = vrot.lane.b32.xlu0 %v2706_v34, %s2456_s23 }
 0x3fc   : > { %v835_v43 = vpop.f32.mrb[4].mxu0 }
 0x3fd   : > { %841 = vperm.xlu1 %2223, %v835_v43   ;;  %v2034_v11 = vpop.f32.mrb[5].mxu0 }
 0x3fe   : > { %859 = vperm.xlu0 %2226, %v835_v43  }
 0x401   : > { %2224 = vset.pattern.permute.xlu1 %v2458_v42 }
 0x402   : > { %2229 = vset.pattern.permute.xlu0 %v2464_v50  ;;  %847 = vperm.xlu1 %2224, %v835_v43  }
 0x403   : > { %877 = vperm.xlu0 %2229, %v835_v43  }
 0x406   : > { %2225 = vset.pattern.permute.xlu1 %v2453_v31 }
 0x407   : > { %2232 = vset.pattern.permute.xlu0 %v2466_v52  ;;  %853 = vperm.xlu1 %2225, %v835_v43  }
 0x408   : > { %895 = vperm.xlu0 %2232, %v835_v43  }
 0x40b   : > { %2227 = vset.pattern.permute.xlu1 %v2462_v48 }
 0x40c   : > { %2235 = vset.pattern.permute.xlu0 %v2468_v54  ;;  %865 = vperm.xlu1 %2227, %v835_v43  }
 0x40d   : > { %913 = vperm.xlu0 %2235, %v835_v43  }
 0x410   : > { %2228 = vset.pattern.permute.xlu1 %v2457_v41 }
 0x411   : > { %871 = vperm.xlu1 %2228, %v835_v43   ;;  %2238 = vset.pattern.permute.xlu0 %v2454_v32 }
 0x415   : > { %2230 = vset.pattern.permute.xlu1 %v2465_v51 }
 0x416   : > { %883 = vperm.xlu1 %2230, %v835_v43  }
 0x41a   : > { %2231 = vset.pattern.permute.xlu1 %v2459_v45 }
 0x41b   : > { %889 = vperm.xlu1 %2231, %v835_v43  }
 0x41f   : > { %2233 = vset.pattern.permute.xlu1 %v2467_v53 }
 0x420   : > { %901 = vperm.xlu1 %2233, %v835_v43  }
 0x424   : > { %2234 = vset.pattern.permute.xlu1 %v2461_v47 }
 0x425   : > { %907 = vperm.xlu1 %2234, %v835_v43  }
 0x429   : > { %2236 = vset.pattern.permute.xlu1 %v2469_v55 }
 0x42a   : > { %919 = vperm.xlu1 %2236, %v835_v43  }
 0x42e   : > { %2237 = vset.pattern.permute.xlu1 %v2463_v49 }
 0x42f   : > { %925 = vperm.xlu1 %2237, %v835_v43  }
 0x433   : > { %1094 = vrot.lane.b32.xlu1 %v2723_v37, %s2455_s21 }
 0x434   : > { %2239 = vset.pattern.permute.xlu1 %v2458_v42 }
 0x471   : > { %v685_v33 = vpop.xlane.xlu0 %684 }
 0x472   : > { %2271 = vrcp.f32 %v685_v33 }
 0x475   : > { %v931_v15 = vpop.permute.xlu0 %930 }
 0x47c   : > { %v2272_v12 = vpop.eup %2271  ;;  %v842_v13 = vpop.permute.xlu1 %841 }
 0x47d   : > { %v687_v14 = vmul.f32 %v2272_v12, %v2270_v9  ;;  %v844_v17 = vsel %vm413_vm3, %v842_v13, 0.0  ;;  %v860_v21 = vpop.permute.xlu0 %859 }
 0x47e   : > { %v862_v27 = vsel %vm3077_vm6, %v860_v21, 0.0  ;;  %vm3092_vm6 = vcmp.eq.s32.totalorder %v2746_v60, 9 }
 0x47f   : > { %2026 = vmatmul.mubr.msk.f32.vlgmr.msra.gmra.mrb[4].mxu1 %vm676_vm14, %v687_v14 }
 0x480   : > { %2036 = vmatpush3.xpose.msk.msra.mxu1 %vm258_vm0, %v931_v15  ;;  %2037 = vmatprep.mubr.msk.f32.mxu1 %vm2452_vm1, %v2450_v0 }
 0x481   : > { %v848_v16 = vpop.permute.xlu1 %847  ;;  %2040 = vmatprep.subr.mxu1 %v2450_v0 }
 0x482   : > { %v850_v18 = vsel %vm414_vm4, %v848_v16, 0.0  ;;  %v878_v36 = vpop.permute.xlu0 %877 }
 0x483   : > { %v851_v20 = vadd.f32 %v850_v18, %v844_v17  ;;  %2038 = vmatmul.mubr.msk.f32.vlgmr.msra.gmra.mrb[6].mxu1 %vm258_vm0, %v2706_v34  ;;  %v880_v44 = vsel %vm419_vm9, %v878_v36, 0.0 }
 0x484   : > { %2042 = vmatprep.mubr.msk.f32.mxu1 %vm2452_vm1, %v2450_v0 }
 0x486   : > { %v854_v22 = vpop.permute.xlu1 %853 }
 0x487   : > { %v856_v25 = vsel %vm415_vm5, %v854_v22, 0.0  ;;  %v896_v61 = vpop.permute.xlu0 %895 }
 0x488   : > { %v857_v26 = vadd.f32 %v856_v25, %v851_v20  ;;  %v898_v2 = vsel %vm3092_vm6, %v896_v61, 0.0  ;;  %vm3095_vm6 = vcmp.eq.s32.totalorder %v2746_v60, 4 }
 0x48a   : > { %v863_v28 = vadd.f32 %v862_v27, %v857_v26 }
 0x48b   : > { %v866_v29 = vpop.permute.xlu1 %865 }
 0x48c   : > { %v868_v30 = vsel %vm3076_vm7, %v866_v29, 0.0  ;;  %vm3091_vm7 = vcmp.eq.s32.totalorder %v2746_v60, 8  ;;  %v914_v7 = vpop.permute.xlu0 %913 }
 0x48d   : > { %v869_v35 = vadd.f32 %v868_v30, %v863_v28  ;;  %v916_v43 = vsel %vm425_vm15, %v914_v7, 0.0 }
 0x490   : > { %v872_v39 = vpop.permute.xlu1 %871 }
 0x491   : > { %v874_v40 = vsel %vm418_vm8, %v872_v39, 0.0 }
 0x492   : > { %v875_v19 = vadd.f32 %v874_v40, %v869_v35 }
 0x494   : > { %v881_v56 = vadd.f32 %v880_v44, %v875_v19 }
 0x495   : > { %v884_v57 = vpop.permute.xlu1 %883 }
 0x496   : > { %v886_v58 = vsel %vm3078_vm10, %v884_v57, 0.0  ;;  %vm3093_vm10 = vcmp.eq.s32.totalorder %v2746_v60, 11 }
 0x497   : > { %v887_v59 = vadd.f32 %v886_v58, %v881_v56 }
 0x49a   : > { %v890_v62 = vpop.permute.xlu1 %889 }
 0x49b   : > { %v892_v63 = vsel %vm3091_vm7, %v890_v62, 0.0  ;;  %vm3096_vm7 = vcmp.eq.s32.totalorder %v2746_v60, 7 }
 0x49c   : > { %v893_v1 = vadd.f32 %v892_v63, %v887_v59 }
 0x49e   : > { %v899_v3 = vadd.f32 %v898_v2, %v893_v1 }
 0x49f   : > { %v902_v4 = vpop.permute.xlu1 %901 }
 0x4a0   : > { %v904_v5 = vsel %vm423_vm13, %v902_v4, 0.0 }
 0x4a1   : > { %v905_v6 = vadd.f32 %v904_v5, %v899_v3 }
 0x4a4   : > { %v908_v8 = vpop.permute.xlu1 %907 }
 0x4a5   : > { %v910_v9 = vsel %vm3093_vm10, %v908_v8, 0.0  ;;  %vm3097_vm10 = vcmp.eq.s32.totalorder %v2746_v60, 8 }
 0x4a6   : > { %v911_v10 = vadd.f32 %v910_v9, %v905_v6 }
 0x4a8   : > { %v917_v11 = vadd.f32 %v916_v43, %v911_v10 }
 0x4a9   : > { %v920_v33 = vpop.permute.xlu1 %919 }
 0x4aa   : > { %v922_v12 = vsel %vm426_vm12, %v920_v33, 0.0 }
 0x4ab   : > { %v923_v13 = vadd.f32 %v922_v12, %v917_v11 }
 0x4ae   : > { %v926_v14 = vpop.permute.xlu1 %925 }
 0x4af   : > { %v928_v15 = vsel %vm427_vm11, %v926_v14, 0.0 }
 0x4b0   : > { %v929_v16 = vadd.f32 %v928_v15, %v923_v13 }
 0x4b2   : > { %v1095_v17 = vpop.permute.xlu1 %1094 }
 0x4b3   : > { %2050 = vmatmul.mubr.msk.f32.vlgmr.msra.gmra.mrb[6].mxu0 %vm258_vm0, %v1095_v17 }
 0x4b4   : > { %2115 = vmatpush3.bf16.xpose.msk.msra.mxu0 %vm2688_vm2, %v2684_v23  ;;  %2066 = vmatprep.mubr.msk.f32.mxu0 %vm2452_vm1, %v2450_v0  ;;  %vm3094_vm2 = vcmp.eq.s32.totalorder %v2746_v60, 3 }
 0x4b5   : > { %2079 = vmatprep.subr.mxu0 %v2450_v0 }
 0x552   : > { %v2871_v18 = vpop.f32.mrb[4].mxu1 }
 0x553   : > { %v2027_v20 = vpop.f32.mrb[5].mxu1 }
 0x556   : > { %v1002_v21 = vpop.f32.mrb[6].mxu1 }
 0x557   : > { %v1003_v22 = vadd.f32 %v1002_v21, %v929_v16  ;;  %v2039_v25 = vpop.f32.mrb[7].mxu1 }
 0x559   : > { %v1006_v26 = vsel %vm676_vm14, %v1003_v22, -inf }
 0x55a   : > { %1007 = vmax.xlane.f32.xlu0 %v1006_v26 }
 0x570   : > { %1017 = vrot.lane.b32.xlu0 %v2706_v34, %s2470_s30 }
 0x586   : > { %v1164_v27 = vpop.f32.mrb[6].mxu0 }
 0x587   : > { %1170 = vperm.xlu0 %2238, %v1164_v27   ;;  %v2051_v23 = vpop.f32.mrb[7].mxu0 }
 0x58b   : > { %2240 = vset.pattern.permute.xlu0 %v2453_v31 }
 0x58c   : > { %1182 = vperm.xlu0 %2240, %v1164_v27  }
 0x590   : > { %2243 = vset.pattern.permute.xlu0 %v2457_v41 }
 0x591   : > { %1200 = vperm.xlu0 %2243, %v1164_v27  }
 0x595   : > { %2246 = vset.pattern.permute.xlu0 %v2459_v45 }
 0x596   : > { %1218 = vperm.xlu0 %2246, %v1164_v27  }
 0x59a   : > { %2249 = vset.pattern.permute.xlu0 %v2461_v47 }
 0x59b   : > { %1236 = vperm.xlu0 %2249, %v1164_v27  }
 0x59f   : > { %2252 = vset.pattern.permute.xlu0 %v2463_v49 }
 0x5a0   : > { %1254 = vperm.xlu0 %2252, %v1164_v27  }
 0x5a4   : > { %1423 = vrot.lane.b32.xlu0 %v2725_v38, %s2455_s21 }
 0x5a5   : > { %2256 = vset.pattern.permute.xlu0 %v2460_v46 }
 0x5e7   : > { %v1008_v24 = vpop.xlane.xlu0 %1007 }
 0x5e8   : > { %v1009_v34 = vsub.f32 %v1003_v22, %v1008_v24 }
 0x5ea   : > { %v1010_v28 = vmul.f32 1.442695, %v1009_v34 }
 0x5eb   : > { %v1018_v29 = vpop.permute.xlu0 %1017 }
 0x5ec   : > { %2273 = vpow2.f32 %v1010_v28  ;;  %2041 = vmatpush3.msra.mxu1 %v1018_v29 }
 0x5ed   : > { %2052 = vmatprep.subr.mxu1 %v2450_v0 }
 0x5f6   : > { %v2274_v30 = vpop.eup %2273 }
 0x5f7   : > { %v1012_v35 = vsel %vm676_vm14, %v2274_v30, 0.0 }
 0x5f8   : > { %1013 = vadd.xlane.f32.xlu1 %v1012_v35 }
 0x606   : > { %v1171_v36 = vpop.permute.xlu0 %1170 }
 0x607   : > { %v1173_v61 = vsel %vm413_vm3, %v1171_v36, 0.0 }
 0x609   : > { %1259 = vrot.lane.b32.xlu1 %v2723_v37, %s2456_s23 }
 0x60b   : > { %v1183_v39 = vpop.permute.xlu0 %1182 }
 0x60c   : > { %v1185_v2 = vsel %vm415_vm5, %v1183_v39, 0.0 }
 0x60d   : > { %1176 = vperm.xlu1 %2239, %v1164_v27  }
 0x610   : > { %v1201_v40 = vpop.permute.xlu0 %1200 }
 0x611   : > { %2241 = vset.pattern.permute.xlu1 %v2460_v46  ;;  %v1203_v10 = vsel %vm418_vm8, %v1201_v40, 0.0 }
 0x612   : > { %1188 = vperm.xlu1 %2241, %v1164_v27  }
 0x615   : > { %v1219_v19 = vpop.permute.xlu0 %1218 }
 0x616   : > { %2242 = vset.pattern.permute.xlu1 %v2462_v48  ;;  %v1221_v16 = vsel %vm3097_vm10, %v1219_v19, 0.0 }
 0x617   : > { %1194 = vperm.xlu1 %2242, %v1164_v27  }
 0x61a   : > { %v1237_v44 = vpop.permute.xlu0 %1236 }
 0x61b   : > { %2244 = vset.pattern.permute.xlu1 %v2464_v50 }
 0x61c   : > { %1206 = vperm.xlu1 %2244, %v1164_v27  }
 0x61f   : > { %v1255_v56 = vpop.permute.xlu0 %1254 }
 0x620   : > { %2245 = vset.pattern.permute.xlu1 %v2465_v51  ;;  %v1257_v39 = vsel %vm427_vm11, %v1255_v56, 0.0 }
 0x621   : > { %1212 = vperm.xlu1 %2245, %v1164_v27  }
 0x623   : > { %v1424_v57 = vpop.permute.xlu0 %1423 }
 0x624   : > { %2067 = vmatmul.mubr.msk.f32.vlgmr.msra.gmra.mrb[8].mxu0 %vm258_vm0, %v1424_v57 }
 0x625   : > { %2247 = vset.pattern.permute.xlu1 %v2466_v52  ;;  %2081 = vmatprep.mubr.msk.f32.mxu0 %vm2452_vm1, %v2450_v0 }
 0x626   : > { %1224 = vperm.xlu1 %2247, %v1164_v27  }
 0x62a   : > { %2248 = vset.pattern.permute.xlu1 %v2467_v53 }
 0x62b   : > { %1230 = vperm.xlu1 %2248, %v1164_v27  }
 0x62f   : > { %2250 = vset.pattern.permute.xlu1 %v2468_v54 }
 0x630   : > { %1242 = vperm.xlu1 %2250, %v1164_v27  }
 0x634   : > { %2251 = vset.pattern.permute.xlu1 %v2469_v55 }
 0x635   : > { %1248 = vperm.xlu1 %2251, %v1164_v27  }
 0x639   : > { %2253 = vset.pattern.permute.xlu1 %v2454_v32 }
 0x685   : > { %v1014_v46 = vpop.xlane.xlu1 %1013 }
 0x686   : > { %2275 = vrcp.f32 %v1014_v46 }
 0x689   : > { %v1260_v58 = vpop.permute.xlu1 %1259 }
 0x68d   : > { %v1177_v59 = vpop.permute.xlu1 %1176 }
 0x68e   : > { %v1179_v62 = vsel %vm414_vm4, %v1177_v59, 0.0 }
 0x68f   : > { %v1180_v63 = vadd.f32 %v1179_v62, %v1173_v61 }
 0x690   : > { %v2276_v1 = vpop.eup %2275 }
 0x691   : > { %v1016_v3 = vmul.f32 %v2276_v1, %v2274_v30  ;;  %v1189_v4 = vpop.permute.xlu1 %1188  ;;  %v1186_v5 = vadd.f32 %v1185_v2, %v1180_v63 }
 0x692   : > { %v1191_v32 = vsel %vm3094_vm2, %v1189_v4, 0.0  ;;  %vm3098_vm2 = vcmp.eq.s32.totalorder %v2746_v60, 9 }
 0x693   : > { %2043 = vmatmul.mubr.msk.f32.vlgmr.msra.gmra.mrb[8].mxu1 %vm676_vm14, %v1016_v3  ;;  %v1192_v6 = vadd.f32 %v1191_v32, %v1186_v5 }
 0x694   : > { %2053 = vmatpush3.xpose.msk.msra.mxu1 %vm258_vm0, %v1260_v58  ;;  %2054 = vmatprep.mubr.msk.f32.mxu1 %vm2452_vm1, %v2450_v0 }
 0x695   : > { %2057 = vmatprep.subr.mxu1 %v2450_v0 }
 0x696   : > { %v1195_v7 = vpop.permute.xlu1 %1194 }
 0x697   : > { %v1197_v8 = vsel %vm3095_vm6, %v1195_v7, 0.0  ;;  %2055 = vmatmul.mubr.msk.f32.vlgmr.msra.gmra.mrb[10].mxu1 %vm258_vm0, %v2723_v37  ;;  %vm3099_vm6 = vcmp.eq.s32.totalorder %v2746_v60, 11 }
 0x698   : > { %v1198_v9 = vadd.f32 %v1197_v8, %v1192_v6  ;;  %2059 = vmatprep.mubr.msk.f32.mxu1 %vm2452_vm1, %v2450_v0  ;;  %v1239_v23 = vsel %vm3099_vm6, %v1237_v44, 0.0 }
 0x69a   : > { %v1204_v43 = vadd.f32 %v1203_v10, %v1198_v9 }
 0x69b   : > { %v1207_v11 = vpop.permute.xlu1 %1206 }
 0x69c   : > { %v1209_v33 = vsel %vm419_vm9, %v1207_v11, 0.0 }
 0x69d   : > { %v1210_v12 = vadd.f32 %v1209_v33, %v1204_v43 }
 0x6a0   : > { %v1213_v13 = vpop.permute.xlu1 %1212 }
 0x6a1   : > { %v1215_v14 = vsel %vm3096_vm7, %v1213_v13, 0.0  ;;  %vm3100_vm7 = vcmp.eq.s32.totalorder %v2746_v60, 3 }
 0x6a2   : > { %v1216_v15 = vadd.f32 %v1215_v14, %v1210_v12 }
 0x6a4   : > { %v1222_v17 = vadd.f32 %v1221_v16, %v1216_v15 }
 0x6a5   : > { %v1225_v20 = vpop.permute.xlu1 %1224 }
 0x6a6   : > { %v1227_v21 = vsel %vm3098_vm2, %v1225_v20, 0.0 }
 0x6a7   : > { %v1228_v22 = vadd.f32 %v1227_v21, %v1222_v17 }
 0x6aa   : > { %v1231_v25 = vpop.permute.xlu1 %1230 }
 0x6ab   : > { %v1233_v26 = vsel %vm423_vm13, %v1231_v25, 0.0 }
 0x6ac   : > { %v1234_v27 = vadd.f32 %v1233_v26, %v1228_v22 }
 0x6ae   : > { %v1240_v24 = vadd.f32 %v1239_v23, %v1234_v27 }
 0x6af   : > { %v1243_v34 = vpop.permute.xlu1 %1242 }
 0x6b0   : > { %v1245_v28 = vsel %vm425_vm15, %v1243_v34, 0.0 }
 0x6b1   : > { %v1246_v29 = vadd.f32 %v1245_v28, %v1240_v24 }
 0x6b4   : > { %v1249_v30 = vpop.permute.xlu1 %1248 }
 0x6b5   : > { %v1251_v35 = vsel %vm426_vm12, %v1249_v30, 0.0 }
 0x6b6   : > { %v1252_v36 = vadd.f32 %v1251_v35, %v1246_v29 }
 0x6b8   : > { %v1258_v40 = vadd.f32 %v1257_v39, %v1252_v36 }
 0x6f7   : > { %v1493_v19 = vpop.f32.mrb[8].mxu0 }
 0x6f8   : > { %v2068_v57 = vpop.f32.mrb[9].mxu0 }
 0x766   : > { %v2939_v46 = vpop.f32.mrb[8].mxu1 }
 0x767   : > { %v2044_v44 = vpop.f32.mrb[9].mxu1 }
 0x76a   : > { %v1331_v58 = vpop.f32.mrb[10].mxu1 }
 0x76b   : > { %v1332_v59 = vadd.f32 %v1331_v58, %v1258_v40  ;;  %v2056_v61 = vpop.f32.mrb[11].mxu1 }
 0x76d   : > { %v1335_v62 = vsel %vm676_vm14, %v1332_v59, -inf }
 0x76e   : > { %1336 = vmax.xlane.f32.xlu1 %v1335_v62 }
 0x77f   : > { %1346 = vrot.lane.b32.xlu1 %v2723_v37, %s2470_s30 }
 0x783   : > { %1499 = vperm.xlu1 %2253, %v1493_v19  }
 0x787   : > { %2254 = vset.pattern.permute.xlu1 %v2458_v42 }
 0x788   : > { %1505 = vperm.xlu1 %2254, %v1493_v19  }
 0x78c   : > { %2255 = vset.pattern.permute.xlu1 %v2453_v31 }
 0x78d   : > { %1511 = vperm.xlu1 %2255, %v1493_v19  }
 0x791   : > { %2257 = vset.pattern.permute.xlu1 %v2462_v48 }
 0x792   : > { %1523 = vperm.xlu1 %2257, %v1493_v19  }
 0x796   : > { %2258 = vset.pattern.permute.xlu1 %v2457_v41 }
 0x797   : > { %1529 = vperm.xlu1 %2258, %v1493_v19  }
 0x79b   : > { %2260 = vset.pattern.permute.xlu1 %v2465_v51 }
 0x79c   : > { %1541 = vperm.xlu1 %2260, %v1493_v19  }
 0x7a0   : > { %2261 = vset.pattern.permute.xlu1 %v2459_v45 }
 0x7a1   : > { %1547 = vperm.xlu1 %2261, %v1493_v19  }
 0x7a5   : > { %2263 = vset.pattern.permute.xlu1 %v2467_v53 }
 0x7a6   : > { %1559 = vperm.xlu1 %2263, %v1493_v19  }
 0x7aa   : > { %2264 = vset.pattern.permute.xlu1 %v2461_v47 }
 0x7ab   : > { %1565 = vperm.xlu1 %2264, %v1493_v19  }
 0x7af   : > { %2266 = vset.pattern.permute.xlu1 %v2469_v55 }
 0x7b0   : > { %1577 = vperm.xlu1 %2266, %v1493_v19  }
 0x7b4   : > { %2267 = vset.pattern.permute.xlu1 %v2463_v49 }
 0x7b5   : > { %1583 = vperm.xlu1 %2267, %v1493_v19  }
 0x7fb   : > { %v1337_v31 = vpop.xlane.xlu1 %1336 }
 0x7fc   : > { %v1338_v37 = vsub.f32 %v1332_v59, %v1337_v31 }
 0x7fe   : > { %v1339_v41 = vmul.f32 1.442695, %v1338_v37 }
 0x7ff   : > { %v1347_v42 = vpop.permute.xlu1 %1346 }
 0x800   : > { %2277 = vpow2.f32 %v1339_v41  ;;  %2058 = vmatpush3.msra.mxu1 %v1347_v42 }
 0x801   : > { %2069 = vmatprep.subr.mxu1 %v2450_v0 }
 0x80a   : > { %v2278_v45 = vpop.eup %2277 }
 0x80b   : > { %v1341_v48 = vsel %vm676_vm14, %v2278_v45, 0.0 }
 0x80c   : > { %1342 = vadd.xlane.f32.xlu0 %v1341_v48 }
 0x822   : > { %1588 = vrot.lane.b32.xlu0 %v2725_v38, %s2456_s23 }
 0x826   : > { %1517 = vperm.xlu0 %2256, %v1493_v19  }
 0x82a   : > { %2259 = vset.pattern.permute.xlu0 %v2464_v50 }
 0x82b   : > { %1535 = vperm.xlu0 %2259, %v1493_v19  }
 0x82f   : > { %2262 = vset.pattern.permute.xlu0 %v2466_v52 }
 0x830   : > { %1553 = vperm.xlu0 %2262, %v1493_v19  }
 0x834   : > { %2265 = vset.pattern.permute.xlu0 %v2468_v54 }
 0x835   : > { %1571 = vperm.xlu0 %2265, %v1493_v19  }
 0x839   : > { %2268 = vset.pattern.permute.xlu0 %v2463_v49  ;;  %v1500_v49 = vpop.permute.xlu1 %1499 }
 0x83a   : > { %v1502_v63 = vsel %vm413_vm3, %v1500_v49, 0.0  ;;  %vm3102_vm3 = vcmp.eq.s32.totalorder %v2746_v60, 7 }
 0x83d   : > { %v1506_v50 = vpop.permute.xlu1 %1505 }
 0x83e   : > { %v1508_v54 = vsel %vm414_vm4, %v1506_v50, 0.0  ;;  %vm3103_vm4 = vmmov %vm3097_vm10 }
 0x83f   : > { %v1509_v2 = vadd.f32 %v1508_v54, %v1502_v63  ;;  %v406_v54 = vld [vmem:[%s3068_s3] sm:$0x1] }
 0x841   : > { %v1512_v52 = vpop.permute.xlu1 %1511 }
 0x842   : > { %v1514_v1 = vsel %vm415_vm5, %v1512_v52, 0.0  ;;  %vm3104_vm5 = vmmov %vm3098_vm2 }
 0x843   : > { %v1515_v4 = vadd.f32 %v1514_v1, %v1509_v2 }
 0x845   : > { %v1524_v5 = vpop.permute.xlu1 %1523 }
 0x849   : > { %v1530_v6 = vpop.permute.xlu1 %1529 }
 0x84a   : > { %v1532_v9 = vsel %vm418_vm8, %v1530_v6, 0.0  ;;  %vm3105_vm8 = vmmov %vm3099_vm6 }
 0x84d   : > { %v1542_v11 = vpop.permute.xlu1 %1541 }
 0x84e   : > { %v1544_v12 = vsel %vm3102_vm3, %v1542_v11, 0.0 }
 0x851   : > { %v1548_v13 = vpop.permute.xlu1 %1547 }
 0x852   : > { %v1550_v15 = vsel %vm3103_vm4, %v1548_v13, 0.0 }
 0x855   : > { %v1560_v20 = vpop.permute.xlu1 %1559 }
 0x856   : > { %v1562_v25 = vsel %vm423_vm13, %v1560_v20, 0.0 }
 0x859   : > { %v1566_v26 = vpop.permute.xlu1 %1565 }
 0x85a   : > { %v1568_v23 = vsel %vm3105_vm8, %v1566_v26, 0.0 }
 0x85d   : > { %v1578_v28 = vpop.permute.xlu1 %1577 }
 0x85e   : > { %v1580_v35 = vsel %vm426_vm12, %v1578_v28, 0.0 }
 0x861   : > { %v1584_v36 = vpop.permute.xlu1 %1583 }
 0x862   : > { %v1586_v57 = vsel %vm427_vm11, %v1584_v36, 0.0  ;;  %vm1766_vm11 = vcmask 785408  }
 0x899   : > { %v1343_v47 = vpop.xlane.xlu0 %1342 }
 0x89a   : > { %2279 = vrcp.f32 %v1343_v47 }
 0x89d   : > { %v1589_v55 = vpop.permute.xlu0 %1588 }
 0x8a4   : > { %v2280_v51 = vpop.eup %2279 }
 0x8a5   : > { %v1345_v53 = vmul.f32 %v2280_v51, %v2278_v45  ;;  %v1518_v56 = vpop.permute.xlu0 %1517 }
 0x8a6   : > { %v1520_v3 = vsel %vm3100_vm7, %v1518_v56, 0.0 }
 0x8a7   : > { %2060 = vmatmul.mubr.msk.f32.vlgmr.msra.gmra.mrb[12].mxu1 %vm676_vm14, %v1345_v53 }
 0x8a8   : > { %2070 = vmatpush3.xpose.msk.msra.mxu1 %vm258_vm0, %v1589_v55  ;;  %2071 = vmatprep.mubr.msk.f32.mxu1 %vm2452_vm1, %v2450_v0 }
 0x8a9   : > { %2074 = vmatprep.subr.mxu1 %v2450_v0 }
 0x8aa   : > { %v1536_v8 = vpop.permute.xlu0 %1535 }
 0x8ab   : > { %2072 = vmatmul.mubr.msk.f32.vlgmr.msra.gmra.mrb[14].mxu1 %vm258_vm0, %v2725_v38  ;;  %v1538_v43 = vsel %vm419_vm9, %v1536_v8, 0.0  ;;  %vm1764_vm9 = vcmask 523264  }
 0x8ac   : > { %2076 = vmatprep.mubr.msk.f32.mxu1 %vm2452_vm1, %v2450_v0  ;;  %v1521_v0 = vadd.f32 %v1520_v3, %v1515_v4  ;;  %vm3101_vm1 = vcmp.eq.s32.totalorder %v2746_v60, 4 }
 0x8ad   : > { %v1526_v32 = vsel %vm3101_vm1, %v1524_v5, 0.0 }
 0x8ae   : > { %v1527_v7 = vadd.f32 %v1526_v32, %v1521_v0 }
 0x8af   : > { %v1554_v16 = vpop.permute.xlu0 %1553 }
 0x8b0   : > { %v1533_v10 = vadd.f32 %v1532_v9, %v1527_v7  ;;  %v1556_v21 = vsel %vm3104_vm5, %v1554_v16, 0.0 }
 0x8b2   : > { %v1539_v33 = vadd.f32 %v1538_v43, %v1533_v10 }
 0x8b4   : > { %v1545_v14 = vadd.f32 %v1544_v12, %v1539_v33  ;;  %v1572_v24 = vpop.permute.xlu0 %1571 }
 0x8b5   : > { %v1574_v29 = vsel %vm425_vm15, %v1572_v24, 0.0 }
 0x8b6   : > { %v1551_v17 = vadd.f32 %v1550_v15, %v1545_v14 }
 0x8b8   : > { %v1557_v22 = vadd.f32 %v1556_v21, %v1551_v17 }
 0x8ba   : > { %v1563_v27 = vadd.f32 %v1562_v25, %v1557_v22 }
 0x8bc   : > { %v1569_v34 = vadd.f32 %v1568_v23, %v1563_v27 }
 0x8be   : > { %v1575_v30 = vadd.f32 %v1574_v29, %v1569_v34 }
 0x8c0   : > { %v1581_v39 = vadd.f32 %v1580_v35, %v1575_v30 }
 0x8c2   : > { %v1587_v44 = vadd.f32 %v1586_v57, %v1581_v39 }
 0x97a   : > { %v1418_v40 = vpop.f32.mrb[12].mxu1 }
 0x97b   : > { %v2061_v19 = vpop.f32.mrb[13].mxu1 }
 0x97e   : > { %v1660_v58 = vpop.f32.mrb[14].mxu1 }
 0x97f   : > { %v1661_v59 = vadd.f32 %v1660_v58, %v1587_v44  ;;  %v2073_v61 = vpop.f32.mrb[15].mxu1 }
 0x981   : > { %v1664_v62 = vsel %vm676_vm14, %v1661_v59, -inf }
 0x982   : > { %1665 = vmax.xlane.f32.xlu0 %v1664_v62 }
 0x998   : > { %1675 = vrot.lane.b32.xlu0 %v2725_v38, %s2470_s30 }
 0x99c   : > { %1756 = vrot.lane.b32.xlu0 %v1418_v40, %s2470_s30 }
 0xa0f   : > { %v1666_v31 = vpop.xlane.xlu0 %1665 }
 0xa10   : > { %v1667_v37 = vsub.f32 %v1661_v59, %v1666_v31 }
 0xa12   : > { %v1668_v41 = vmul.f32 1.442695, %v1667_v37 }
 0xa13   : > { %v1676_v42 = vpop.permute.xlu0 %1675 }
 0xa14   : > { %2281 = vpow2.f32 %v1668_v41  ;;  %2075 = vmatpush3.msra.mxu1 %v1676_v42 }
 0xa1e   : > { %v2282_v60 = vpop.eup %2281 }
 0xa1f   : > { %v1670_v45 = vsel %vm676_vm14, %v2282_v60, 0.0 }
 0xa20   : > { %1671 = vadd.xlane.f32.xlu1 %v1670_v45 }
 0xa31   : > { %1752 = vrot.lane.b32.xlu1 %v2939_v46, %s2455_s21  ;;  %v1757_v46 = vpop.permute.xlu0 %1756 }
 0xaad   : > { %v1672_v48 = vpop.xlane.xlu1 %1671 }
 0xaae   : > { %2283 = vrcp.f32 %v1672_v48 }
 0xab1   : > { %v1753_v55 = vpop.permute.xlu1 %1752 }
 0xab2   : > { %v1763_v49 = vsel %vm258_vm0, %v2871_v18, %v1753_v55 }
 0xab3   : > { %v1765_v52 = vsel %vm1764_vm9, %v1763_v49, %v1757_v46 }
 0xab8   : > { %v2284_v47 = vpop.eup %2283 }
 0xab9   : > { %v1674_v51 = vmul.f32 %v2284_v47, %v2282_v60 }
 0xabb   : > { %2077 = vmatmul.mubr.msk.f32.vlgmr.msra.gmra.mrb[16].mxu1 %vm676_vm14, %v1674_v51 }
 0xb8e   : > { %v1747_v38 = vpop.f32.mrb[16].mxu1 }
 0xb8f   : > { %1760 = vrot.lane.b32.xlu1 %v1747_v38, %s2456_s23  ;;  %v2078_v53 = vpop.f32.mrb[17].mxu1 }
 0xc01   : > { %v1761_v50 = vpop.permute.xlu1 %1760 }
 0xc02   : > { %v1767_v56 = vsel %vm1766_vm11, %v1765_v52, %v1761_v50 }
 0xc03   : > { %2080 = vmatpush3.msra.mxu0 %v1767_v56 }
 0xc04   : > { %2082 = vmatmul.mubr.msk.f32.vlgmr.msra.gmra.mrb[10].mxu0 %vm676_vm14, %v406_v54 }
 0xcd7   : > { %v1837_v18 = vpop.f32.mrb[10].mxu0 }
 0xcd8   : > { %1841 = vst [vmem:[%s240_s7] sm:$0x1] %v1837_v18  ;;  %v2083_v63 = vpop.f32.mrb[11].mxu0 }
 0xcd9   : > { %2384 = shalt.err (!%p2381_p2)
}
 0xcda   : > { %s2385_s5 = scalar_lea.hbm %s3023_s28, 16  ;;  %s2389_s23 = scalar_lea.hbm %s3069_s4, 32 }
 0xcdb   : > { %p2386_p13 = scmp.ne.s32.totalorder %s3023_s28, %s2385_s5  ;;  %p2390_p4 = scmp.lt.u32.totalorder %s3023_s28, %s3069_s4 }
 0xcdc   : > { %p2391_p7 = scmp.lt.u32.totalorder %s2389_s23, %s2385_s5  ;;  %p2393_p8 = scmp.lt.u32.totalorder %s2385_s5, %s3023_s28 }
 0xcdd   : > { %p2387_p6 = pnand %p2386_p13, %p3106_p0 }
 0xcde   : > { %p2392_p11 = por %p2391_p7, %p2390_p4 }
 0xcdf   : > { %p2388_p10 = pneg %p2387_p6 }
 0xce0   : > { %p2394_p1 = por %p2393_p8, %p2392_p11 }
 0xce2   : > { %p2395_p3 = pnand %p2394_p1, %p2388_p10 }
 0xce4   : > { %2398 = shalt.err (!%p2395_p3)
}
 0xce5   : > { %2126 = dma.vmem_to_hbm [thread:$0]  (%p3106_p0), %s3018_s12, 16, %s3023_s28, %s1843_s27  }
 0xce6 PF: > { %s1867_s25 = sand.u32 1, %s2429_s15   ;;  %p3107_p5 = scmp.ne.s32.totalorder %s3080_s22, 0 }
 0xce7   : > { %p3108_p9 = scmp.ge.s32.totalorder %s2441_s18, 2  ;;  %s1868_s7 = scalar_lea.sflag [#allocation4], %s1867_s25 }
 0xce9   : > { %p2140_p12 = pnand %p3108_p9, %p3107_p5 }
 0xceb   : > { %2424 = dma.done.wait (!%p2140_p12), %s1868_s7, 16  }
 0xcec   : > { %2426 = vsyncadd (!%p2140_p12), %s1868_s7, 4294967280  ;;  %p18_p2 = scmp.ge.s32.totalorder %s2607_s11, 4   ;;  %s3109_s15 = smov %s2433_s16 }
 0xced   : > { %s3110_s16 = smov %s2437_s17  ;;  %s3111_s17 = smov %s2616_s14 }
 0xcee   : > { %s3112_s18 = smov %s2607_s11  ;;  %20 = sbr.rel (!%p18_p2) target bundleno = 6 (0x6), region = 89 }
 0xcf5   :  { %1872 = vsyncpa [#allocation3], 1 }
 0xcf6   :  { %1874 = vsyncpa [#allocation3 + $0x1], 1 }
 0xcf7   :  { %1875 = vsyncpa [#allocation6], 1 }
 0xcf8   :  { %1876 = vsyncpa [#allocation4], 1 }
 0xcf9   :  { %1878 = vsyncpa [#allocation4 + $0x1], 1 }

</bundles_post_ra>
